<compile_context>
chip_gen: v7x
topology: tpu7x:2x2x1
jax: 0.10.0
libtpu: 0.0.40
codegen_flags: <defaults>
</compile_context>

<pallas_src>
import jax
import jax.numpy as jnp
from jax.experimental import pallas as pl
from jax.experimental.pallas import tpu as pltpu

INPUT_DIM = 42
IN_P = INPUT_DIM + 1          # +1 ones-row for the folded layer-1 bias
H1 = 512
H2 = 256
OUT = 1
NEG_SLOPE = 0.2


def _mlp_kernel(xT_ref, w1T_ref, w2T_ref, b2_ref, w3_ref, b3_ref, o_ref):
    # Layer 1: (512, 43) @ (43, TB) -> (512, TB); bf16 operands, f32 accumulate.
    # Bias is folded into the last column of w1T (last row of xT is ones).
    h1 = jnp.dot(w1T_ref[...], xT_ref[...], preferred_element_type=jnp.float32)
    h1 = h1.astype(jnp.bfloat16)
    h1 = jnp.maximum(h1, NEG_SLOPE * h1)            # LeakyReLU(0.2), bf16

    # Layer 2: (256, 512) @ (512, TB) -> (256, TB); f32 epilogue.
    h2 = jnp.dot(w2T_ref[...], h1, preferred_element_type=jnp.float32)
    h2 = h2 + b2_ref[...]                            # (256, 1) broadcast over lanes
    h2 = jnp.maximum(h2, NEG_SLOPE * h2)             # LeakyReLU(0.2), f32

    # Layer 3 (output width 1): VPU multiply + sublane reduce -> lane-major (1, TB).
    z = jnp.sum(h2 * w3_ref[...], axis=0, keepdims=True) + b3_ref[...]

    o_ref[...] = jax.nn.sigmoid(z).astype(o_ref.dtype)   # dense (1, TB) store


def _round_up(n, m):
    return ((n + m - 1) // m) * m


def _choose_tb(B, block_b):
    """Batch tile along the lane axis."""
    b = _round_up(B, 16)
    if b < 512:
        return b                                    # single tile == full extent (legal)
    # >= 2 lane-aligned (multiple-of-128) tiles so v7x megacore splits the batch.
    tb = _round_up(-(-b // 2), 128)
    return max(128, min(_round_up(block_b, 128), tb))


def discriminator_forward(x, params, *, block_b=2048):
    """x: (B, INPUT_DIM) float32. params: device params from init_params()."""
    B = x.shape[0]
    w1T, w2T = params["w1T"], params["w2T"]
    b2, w3, b3 = params["b2"], params["w3"], params["b3"]

    TB = _choose_tb(B, block_b)
    Bp = _round_up(B, TB)
    n_blocks = Bp // TB

    # Append the ones column (folded bias), transpose to feature-major, bf16.
    ones = jnp.ones((B, 1), x.dtype)
    xT = jnp.concatenate([x, ones], axis=1).astype(jnp.bfloat16).T   # (43, B)
    if Bp != B:
        xT = jnp.pad(xT, ((0, 0), (0, Bp - B)))

    cost = pl.CostEstimate(
        flops=2 * Bp * (IN_P * H1 + H1 * H2 + H2),
        transcendentals=Bp,  # sigmoid
        bytes_accessed=(Bp * IN_P * 2 + Bp * 4
                        + w1T.size * 2 + w2T.size * 2
                        + (b2.size + w3.size + b3.size) * 4),
    )

    # Weights / biases: full block, constant index_map -> VMEM-resident across
    # all grid steps (no re-DMA per tile).
    resident = lambda a: pl.BlockSpec(a.shape, lambda i, _n=a.ndim: (0,) * _n)

    out = pl.pallas_call(
        _mlp_kernel,
        out_shape=jax.ShapeDtypeStruct((1, Bp), jnp.float32),
        grid=(n_blocks,),
        in_specs=[
            pl.BlockSpec((IN_P, TB), lambda i: (0, i)),   # x tile (batch on lanes)
            resident(w1T), resident(w2T),
            resident(b2), resident(w3), resident(b3),
        ],
        out_specs=pl.BlockSpec((1, TB), lambda i: (0, i)),
        compiler_params=pltpu.CompilerParams(
            dimension_semantics=("parallel",),            # megacore on v7x
        ),
        cost_estimate=cost,
    )(xT, w1T, w2T, b2, w3, b3)

    return out[0, :B].reshape(B, OUT)


def init_params(key):
    """Deterministic synthetic init (uniform, ~torch kaiming-uniform scale).

    Returns (f32_params, device_params); device params are transposed
    (out, in), with b1 folded into w1 and matmul weights in bf16.
    """
    ks = jax.random.split(key, 6)

    def lin(kw, kb, fan_in, fan_out):
        bound = fan_in ** -0.5
        w = jax.random.uniform(kw, (fan_in, fan_out), jnp.float32, -bound, bound)
        b = jax.random.uniform(kb, (1, fan_out), jnp.float32, -bound, bound)
        return w, b

    w1, b1 = lin(ks[0], ks[1], INPUT_DIM, H1)
    w2, b2 = lin(ks[2], ks[3], H1, H2)
    w3, b3 = lin(ks[4], ks[5], H2, OUT)

    f32 = {"w1": w1, "b1": b1, "w2": w2, "b2": b2, "w3": w3, "b3": b3}
    dev = {
        # (512, 43): bias appended as the extra input column, stored transposed.
        "w1T": jnp.concatenate([w1, b1], axis=0).T.astype(jnp.bfloat16),
        "w2T": w2.T.astype(jnp.bfloat16),                 # (256, 512)
        "b2":  b2.T,                                      # (256, 1) f32
        "w3":  w3,                                        # (256, 1) f32
        "b3":  b3,                                        # (1, 1)   f32
    }
    return f32, dev


def _reference_f32(x, p):
    """Pure-f32 reference matching the PyTorch module."""
    h = x @ p["w1"] + p["b1"]
    h = jnp.where(h > 0, h, NEG_SLOPE * h)
    h = h @ p["w2"] + p["b2"]
    h = jnp.where(h > 0, h, NEG_SLOPE * h)
    z = h @ p["w3"] + p["b3"]
    return jax.nn.sigmoid(z)


def _reference_matched(x, dev):
    """Reference mirroring the kernel's bf16-operand / f32-accumulate math."""
    ones = jnp.ones((x.shape[0], 1), x.dtype)
    xa = jnp.concatenate([x, ones], axis=1).astype(jnp.bfloat16)
    h = jnp.dot(xa, dev["w1T"].T, preferred_element_type=jnp.float32)
    h = h.astype(jnp.bfloat16)
    h = jnp.maximum(h, NEG_SLOPE * h)
    h = jnp.dot(h, dev["w2T"].T, preferred_element_type=jnp.float32) + dev["b2"].T
    h = jnp.maximum(h, NEG_SLOPE * h)
    z = jnp.sum(h * dev["w3"].T, axis=-1, keepdims=True) + dev["b3"]
    return jax.nn.sigmoid(z)


if __name__ == "__main__":
    key = jax.random.PRNGKey(0)
    k_x, k_p = jax.random.split(key)

    B = 8
    x = jax.random.normal(k_x, (B, INPUT_DIM), jnp.float32)
    params_f32, params_dev = init_params(k_p)

    out = discriminator_forward(x, params_dev)
    out = jax.block_until_ready(out)

    assert out.shape == (B, OUT)

    ref_matched = _reference_matched(x, params_dev)
    assert jnp.allclose(out, ref_matched, atol=5e-4, rtol=5e-4), \
        "mismatch vs bf16-matched reference"

    ref_f32 = _reference_f32(x, params_f32)
    assert jnp.allclose(out, ref_f32, atol=2e-2), \
        "mismatch vs f32 reference beyond bf16 tolerance"

    print("KERNEL_OK")
</pallas_src>

<mosaic_0001>
module attributes {stable_mosaic.version = 11 : i64} {
  func.func @_mlp_kernel(%arg0: i32, %arg1: memref<43x16xbf16, #tpu.memory_space<vmem>>, %arg2: memref<512x43xbf16, #tpu.memory_space<vmem>>, %arg3: memref<256x512xbf16, #tpu.memory_space<vmem>>, %arg4: memref<256x1xf32, #tpu.memory_space<vmem>>, %arg5: memref<256x1xf32, #tpu.memory_space<vmem>>, %arg6: memref<1x1xf32, #tpu.memory_space<vmem>>, %arg7: memref<1x16xf32, #tpu.memory_space<vmem>>) attributes {dimension_semantics = [#tpu.dimension_semantics<parallel>], iteration_bounds = array<i64: 1>, scalar_prefetch = 0 : i64, scratch_operands = 0 : i64, tpu.core_type = #tpu.core_type<tc>, window_params = [{transform_indices = @transform_0, window_bounds = array<i64: 43, 16>}, {pipeline_mode = #tpu.pipeline_mode<synchronous>, transform_indices = @transform_1, window_bounds = array<i64: 512, 43>}, {pipeline_mode = #tpu.pipeline_mode<synchronous>, transform_indices = @transform_2, window_bounds = array<i64: 256, 512>}, {pipeline_mode = #tpu.pipeline_mode<synchronous>, transform_indices = @transform_3, window_bounds = array<i64: 256, 1>}, {pipeline_mode = #tpu.pipeline_mode<synchronous>, transform_indices = @transform_4, window_bounds = array<i64: 256, 1>}, {pipeline_mode = #tpu.pipeline_mode<synchronous>, transform_indices = @transform_5, window_bounds = array<i64: 1, 1>}, {transform_indices = @transform_6, window_bounds = array<i64: 1, 16>}]} {
    %c0 = arith.constant 0 : index
    %c0_0 = arith.constant 0 : index
    %0 = vector.load %arg2[%c0, %c0_0] : memref<512x43xbf16, #tpu.memory_space<vmem>>, vector<512x43xbf16>
    %c0_1 = arith.constant 0 : index
    %c0_2 = arith.constant 0 : index
    %1 = vector.load %arg1[%c0_1, %c0_2] : memref<43x16xbf16, #tpu.memory_space<vmem>>, vector<43x16xbf16>
    %cst = arith.constant dense<0.000000e+00> : vector<512x16xf32>
    %2 = tpu.matmul %0, %1, %cst {dimension_numbers = #tpu.dot_dimension_numbers<[1], [0], [0], [1], [0, 0, 1, 1], [], []>} : vector<512x43xbf16>, vector<43x16xbf16>, vector<512x16xf32> -> vector<512x16xf32>
    %3 = arith.truncf %2 : vector<512x16xf32> to vector<512x16xbf16>
    %cst_3 = arith.constant 2.001950e-01 : bf16
    %4 = vector.broadcast %cst_3 : bf16 to vector<512x16xbf16>
    %5 = arith.mulf %4, %3 : vector<512x16xbf16>
    %6 = arith.maximumf %3, %5 : vector<512x16xbf16>
    %c0_4 = arith.constant 0 : index
    %c0_5 = arith.constant 0 : index
    %7 = vector.load %arg3[%c0_4, %c0_5] : memref<256x512xbf16, #tpu.memory_space<vmem>>, vector<256x512xbf16>
    %cst_6 = arith.constant dense<0.000000e+00> : vector<256x16xf32>
    %8 = tpu.matmul %7, %6, %cst_6 {dimension_numbers = #tpu.dot_dimension_numbers<[1], [0], [0], [1], [0, 0, 1, 1], [], []>} : vector<256x512xbf16>, vector<512x16xbf16>, vector<256x16xf32> -> vector<256x16xf32>
    %c0_7 = arith.constant 0 : index
    %c0_8 = arith.constant 0 : index
    %9 = vector.load %arg4[%c0_7, %c0_8] : memref<256x1xf32, #tpu.memory_space<vmem>>, vector<256x1xf32>
    %10 = vector.broadcast %9 : vector<256x1xf32> to vector<256x16xf32>
    %11 = arith.addf %8, %10 : vector<256x16xf32>
    %cst_9 = arith.constant 2.000000e-01 : f32
    %12 = vector.broadcast %cst_9 : f32 to vector<256x16xf32>
    %13 = arith.mulf %12, %11 : vector<256x16xf32>
    %14 = arith.maximumf %11, %13 : vector<256x16xf32>
    %c0_10 = arith.constant 0 : index
    %c0_11 = arith.constant 0 : index
    %15 = vector.load %arg5[%c0_10, %c0_11] : memref<256x1xf32, #tpu.memory_space<vmem>>, vector<256x1xf32>
    %16 = vector.broadcast %15 : vector<256x1xf32> to vector<256x16xf32>
    %17 = arith.mulf %14, %16 : vector<256x16xf32>
    %cst_12 = arith.constant dense<0.000000e+00> : vector<16xf32>
    %18 = vector.multi_reduction <add>, %17, %cst_12 [0] : vector<256x16xf32> to vector<16xf32>
    %19 = vector.shape_cast %18 : vector<16xf32> to vector<1x16xf32>
    %c0_13 = arith.constant 0 : index
    %c0_14 = arith.constant 0 : index
    %20 = vector.load %arg6[%c0_13, %c0_14] : memref<1x1xf32, #tpu.memory_space<vmem>>, vector<1x1xf32>
    %21 = vector.broadcast %20 : vector<1x1xf32> to vector<1x16xf32>
    %22 = arith.addf %19, %21 : vector<1x16xf32>
    %23 = arith.negf %22 : vector<1x16xf32>
    %24 = math.exp %23 : vector<1x16xf32>
    %cst_15 = arith.constant 1.000000e+00 : f32
    %25 = vector.broadcast %cst_15 : f32 to vector<1x16xf32>
    %26 = arith.addf %25, %24 : vector<1x16xf32>
    %27 = arith.divf %25, %26 : vector<1x16xf32>
    %c0_16 = arith.constant 0 : index
    %c0_17 = arith.constant 0 : index
    %28 = vector.load %arg7[%c0_16, %c0_17] : memref<1x16xf32, #tpu.memory_space<vmem>>, vector<1x16xf32>
    tpu.vector_store %arg7[%c0_16, %c0_17], %27 {strides = array<i32>} : memref<1x16xf32, #tpu.memory_space<vmem>>, vector<1x16xf32>,
    return
  }
  func.func @transform_0(%arg0: i32) -> (i32, i32) {
    %c0_i32 = arith.constant 0 : i32
    %c0_i32_0 = arith.constant 0 : i32
    return %c0_i32, %arg0 : i32, i32
  }
  func.func @transform_1(%arg0: i32) -> (i32, i32) {
    %c0_i32 = arith.constant 0 : i32
    %c0_i32_0 = arith.constant 0 : i32
    %c0_i32_1 = arith.constant 0 : i32
    return %c0_i32, %c0_i32_0 : i32, i32
  }
  func.func @transform_2(%arg0: i32) -> (i32, i32) {
    %c0_i32 = arith.constant 0 : i32
    %c0_i32_0 = arith.constant 0 : i32
    %c0_i32_1 = arith.constant 0 : i32
    return %c0_i32, %c0_i32_0 : i32, i32
  }
  func.func @transform_3(%arg0: i32) -> (i32, i32) {
    %c0_i32 = arith.constant 0 : i32
    %c0_i32_0 = arith.constant 0 : i32
    %c0_i32_1 = arith.constant 0 : i32
    return %c0_i32, %c0_i32_0 : i32, i32
  }
  func.func @transform_4(%arg0: i32) -> (i32, i32) {
    %c0_i32 = arith.constant 0 : i32
    %c0_i32_0 = arith.constant 0 : i32
    %c0_i32_1 = arith.constant 0 : i32
    return %c0_i32, %c0_i32_0 : i32, i32
  }
  func.func @transform_5(%arg0: i32) -> (i32, i32) {
    %c0_i32 = arith.constant 0 : i32
    %c0_i32_0 = arith.constant 0 : i32
    %c0_i32_1 = arith.constant 0 : i32
    return %c0_i32, %c0_i32_0 : i32, i32
  }
  func.func @transform_6(%arg0: i32) -> (i32, i32) {
    %c0_i32 = arith.constant 0 : i32
    %c0_i32_0 = arith.constant 0 : i32
    return %c0_i32, %arg0 : i32, i32
  }
}

</mosaic_0001>

<bundles_post_ra>
// kernel: tpu_custom_call.1
= control target key start
LH: loop header
LB: loop body
LE: loop exit
PB: predicated region body
PF: predicated region fallthrough
CT: control target
= control target key end

     0   :  { %s3501_s0 = inlined_call_operand.vmem [shape: bf16[43,16], index: 0, kind: input, shape index: {}]   ;;  %s3502_s1 = inlined_call_operand.vmem [shape: bf16[512,43], index: 1, kind: input, shape index: {}]   ;;  %s3503_s2 = inlined_call_operand.vmem [shape: bf16[256,512], index: 2, kind: input, shape index: {}]   ;;  %s3504_s3 = inlined_call_operand.vmem [shape: f32[256,1], index: 3, kind: input, shape index: {}]   ;;  %s3505_s4 = inlined_call_operand.vmem [shape: f32[256,1], index: 4, kind: input, shape index: {}]   ;;  %s3506_s5 = inlined_call_operand.<no memory space> [shape: f32[1,1], index: 5, kind: input, shape index: {}]   ;;  %s3507_s6 = inlined_call_operand.hbm [shape: f32[1,16], index: 6, kind: output, shape index: {}]  }
   0x1   :  { %v11_v0 = vstv %s3506_s5 }
   0x2   :  { %12 = vst [vmem:[#allocation2] sm:$0x1] %v11_v0 }
   0x3   :  { %v2525_v1 = vld [vmem:[%s3501_s0] sm:$0xff]   ;;  %vm372_vm0 = vcmask 1044480   ;;  %v2526_v2 = vld [vmem:[%s3501_s0 + $0x8] sm:$0xff]   ;;  %vm373_vm1 = vcmask 1045504   ;;  %v2527_v3 = vld [vmem:[%s3501_s0 + $0x10] sm:$0x3f]  }
   0x4   :  { %2444 = vmatprep.subr.bf16.mxu0 %v2525_v1  ;;  %2514 = vmatprep.subr.bf16.mxu1 %v2525_v1  ;;  %v2528_v4 = vld [vmem:[%s3502_s1] sm:$0xff]   ;;  %v2684_v5 = vmov 65535   ;;  %vm275_vm2 = vcmask 351232   ;;  %v2530_v10 = vld [vmem:[%s3502_s1 + $0x8] sm:$0xff]   ;;  %v2532_v12 = vld [vmem:[%s3502_s1 + $0x10] sm:$0xff]  }
   0x5   :  { %2445 = vmatpush3.bf16.msra.mxu0 %v2525_v1  ;;  %2517 = vmatpush3.bf16.msra.mxu1 %v2525_v1  ;;  %v374_v6 = vsel %vm372_vm0, 4294967295, %v2684_v5  ;;  %v2529_v8 = vld [vmem:[%s3502_s1 + $0x80] sm:$0xff]   ;;  %v2531_v11 = vld [vmem:[%s3502_s1 + $0x88] sm:$0xff]   ;;  %v2533_v13 = vld [vmem:[%s3502_s1 + $0x90] sm:$0xff]  }
   0x6   :  { %2446 = vmatprep.subr.bf16.mxu0 %v2526_v2  ;;  %2515 = vmatprep.subr.bf16.mxu1 %v2526_v2  ;;  %v375_v7 = vsel %vm373_vm1, %v374_v6, 0  ;;  %v2534_v14 = vld [vmem:[%s3502_s1 + $0x18] sm:$0xff]   ;;  %v2536_v16 = vld [vmem:[%s3502_s1 + $0x20] sm:$0xff]   ;;  %v2538_v18 = vld [vmem:[%s3502_s1 + $0x28] sm:$0xff]  }
   0x7   :  { %2450 = vmatprep.mubr.msk.bf16.mxu0 %vm275_vm2, %v2528_v4  ;;  %v377_v9 = vand.u32 %v2527_v3, %v375_v7  ;;  %2482 = vmatprep.mubr.msk.bf16.mxu1 %vm275_vm2, %v2529_v8  ;;  %v2535_v15 = vld [vmem:[%s3502_s1 + $0x98] sm:$0xff]   ;;  %v2537_v17 = vld [vmem:[%s3502_s1 + $0xa0] sm:$0xff]   ;;  %v2539_v19 = vld [vmem:[%s3502_s1 + $0xa8] sm:$0xff]  }
   0x8   :  { %v2540_v20 = vld [vmem:[%s3502_s1 + $0x30] sm:$0xff]   ;;  %v2542_v22 = vld [vmem:[%s3502_s1 + $0x38] sm:$0xff]   ;;  %v2544_v24 = vld [vmem:[%s3502_s1 + $0x40] sm:$0xff]  }
   0x9   :  { %2447 = vmatpush3.bf16.msra.mxu0 %v2526_v2  ;;  %2518 = vmatpush3.bf16.msra.mxu1 %v2526_v2  ;;  %v2541_v21 = vld [vmem:[%s3502_s1 + $0xb0] sm:$0xff]   ;;  %v2543_v23 = vld [vmem:[%s3502_s1 + $0xb8] sm:$0xff]   ;;  %v2545_v25 = vld [vmem:[%s3502_s1 + $0xc0] sm:$0xff]  }
   0xa   :  { %2448 = vmatprep.subr.bf16.mxu0 %v377_v9  ;;  %2516 = vmatprep.subr.bf16.mxu1 %v377_v9  ;;  %v2546_v26 = vld [vmem:[%s3502_s1 + $0x48] sm:$0xff]   ;;  %v2548_v28 = vld [vmem:[%s3502_s1 + $0x50] sm:$0xff]   ;;  %v2550_v30 = vld [vmem:[%s3502_s1 + $0x58] sm:$0xff]  }
   0xb   :  { %v2547_v27 = vld [vmem:[%s3502_s1 + $0xc8] sm:$0xff]   ;;  %v2549_v29 = vld [vmem:[%s3502_s1 + $0xd0] sm:$0xff]   ;;  %v2551_v31 = vld [vmem:[%s3502_s1 + $0xd8] sm:$0xff]  }
   0xc   :  { %v2552_v32 = vld [vmem:[%s3502_s1 + $0x60] sm:$0xff]  }
   0xd   :  { %2449 = vmatpush3.bf16.msra.mxu0 %v377_v9  ;;  %2519 = vmatpush3.bf16.msra.mxu1 %v377_v9  ;;  %v2553_v33 = vld [vmem:[%s3502_s1 + $0xe0] sm:$0xff]  }
  0x10   :  { %2451 = vmatmul.mubr.msk.bf16.vlgmr.msra.gmra.mrb[0].mxu0 %vm275_vm2, %v2530_v10  ;;  %2483 = vmatmul.mubr.msk.bf16.vlgmr.msra.gmra.mrb[0].mxu1 %vm275_vm2, %v2531_v11 }
  0x11   :  { %2454 = vmatprep.mubr.msk.bf16.mxu0 %vm275_vm2, %v2532_v12  ;;  %2486 = vmatprep.mubr.msk.bf16.mxu1 %vm275_vm2, %v2533_v13 }
  0x18   :  { %2455 = vmatmul.mubr.msk.bf16.gmra.mrb[4].mxu0 %vm275_vm2, %v2534_v14  ;;  %2487 = vmatmul.mubr.msk.bf16.gmra.mrb[4].mxu1 %vm275_vm2, %v2535_v15 }
  0x19   :  { %2458 = vmatprep.mubr.msk.bf16.mxu0 %vm275_vm2, %v2536_v16  ;;  %2490 = vmatprep.mubr.msk.bf16.mxu1 %vm275_vm2, %v2537_v17 }
  0x20   :  { %2459 = vmatmul.mubr.msk.bf16.gmra.mrb[8].mxu0 %vm275_vm2, %v2538_v18  ;;  %2491 = vmatmul.mubr.msk.bf16.gmra.mrb[8].mxu1 %vm275_vm2, %v2539_v19 }
  0x21   :  { %2462 = vmatprep.mubr.msk.bf16.mxu0 %vm275_vm2, %v2540_v20  ;;  %2494 = vmatprep.mubr.msk.bf16.mxu1 %vm275_vm2, %v2541_v21 }
  0x28   :  { %2463 = vmatmul.mubr.msk.bf16.gmra.mrb[12].mxu0 %vm275_vm2, %v2542_v22  ;;  %2495 = vmatmul.mubr.msk.bf16.gmra.mrb[12].mxu1 %vm275_vm2, %v2543_v23 }
  0x29   :  { %2466 = vmatprep.mubr.msk.bf16.mxu0 %vm275_vm2, %v2544_v24  ;;  %2498 = vmatprep.mubr.msk.bf16.mxu1 %vm275_vm2, %v2545_v25 }
  0x30   :  { %2467 = vmatmul.mubr.msk.bf16.gmra.mrb[16].mxu0 %vm275_vm2, %v2546_v26  ;;  %2499 = vmatmul.mubr.msk.bf16.gmra.mrb[16].mxu1 %vm275_vm2, %v2547_v27 }
  0x31   :  { %2470 = vmatprep.mubr.msk.bf16.mxu0 %vm275_vm2, %v2548_v28  ;;  %2502 = vmatprep.mubr.msk.bf16.mxu1 %vm275_vm2, %v2549_v29 }
  0x38   :  { %2471 = vmatmul.mubr.msk.bf16.gmra.mrb[20].mxu0 %vm275_vm2, %v2550_v30  ;;  %2503 = vmatmul.mubr.msk.bf16.gmra.mrb[20].mxu1 %vm275_vm2, %v2551_v31 }
  0x39   :  { %2474 = vmatprep.mubr.msk.bf16.mxu0 %vm275_vm2, %v2552_v32  ;;  %2506 = vmatprep.mubr.msk.bf16.mxu1 %vm275_vm2, %v2553_v33 }
  0x3a   :  { %13 = vsyncpa [#allocation4], 0  ;;  %v2554_v34 = vld [vmem:[%s3502_s1 + $0x68] sm:$0xff]   ;;  %v2556_v36 = vld [vmem:[%s3502_s1 + $0x70] sm:$0xff]   ;;  %v2685_v40 = vmov 0   ;;  %vm1950_vm3 = vcmask 130048  }
  0x3b   :  { %v2555_v35 = vld [vmem:[%s3502_s1 + $0xe8] sm:$0xff]   ;;  %v2557_v37 = vld [vmem:[%s3502_s1 + $0xf0] sm:$0xff]   ;;  %v2558_v38 = vld [vmem:[%s3502_s1 + $0x78] sm:$0xff]   ;;  %2523 = vset.pattern.permute.xlu0 %v2685_v40  ;;  %2524 = vset.pattern.permute.xlu1 %v2685_v40  ;;  %vm2037_vm4 = vcmask 122880  }
  0x3c   :  { %v2559_v39 = vld [vmem:[%s3502_s1 + $0xf8] sm:$0xff]   ;;  %v828_v41 = vld [vmem:[%s3504_s3] sm:$0xff]  ;;  %v829_v42 = vld [vmem:[%s3504_s3 + $0x8] sm:$0xff] }
  0x3d   :  { %862 = vperm.xlu0 %2523, %v828_v41   ;;  %v830_v43 = vld [vmem:[%s3504_s3 + $0x10] sm:$0xff]  ;;  %v832_v44 = vld [vmem:[%s3504_s3 + $0x20] sm:$0xff]  ;;  %v831_v45 = vld [vmem:[%s3504_s3 + $0x18] sm:$0xff] }
  0x3e   :  { %872 = vperm.xlu1 %2524, %v830_v43   ;;  %v834_v46 = vld [vmem:[%s3504_s3 + $0x30] sm:$0xff]  ;;  %v833_v47 = vld [vmem:[%s3504_s3 + $0x28] sm:$0xff]  ;;  %v836_v48 = vld [vmem:[%s3504_s3 + $0x40] sm:$0xff] }
  0x3f   :  { %v835_v49 = vld [vmem:[%s3504_s3 + $0x38] sm:$0xff]  ;;  %v838_v50 = vld [vmem:[%s3504_s3 + $0x50] sm:$0xff]  ;;  %v837_v51 = vld [vmem:[%s3504_s3 + $0x48] sm:$0xff] }
  0x40   :  { %2475 = vmatmul.mubr.msk.bf16.gmra.mrb[24].mxu0 %vm275_vm2, %v2554_v34  ;;  %2507 = vmatmul.mubr.msk.bf16.gmra.mrb[24].mxu1 %vm275_vm2, %v2555_v35  ;;  %v840_v52 = vld [vmem:[%s3504_s3 + $0x60] sm:$0xff]  ;;  %v839_v53 = vld [vmem:[%s3504_s3 + $0x58] sm:$0xff]  ;;  %v842_v54 = vld [vmem:[%s3504_s3 + $0x70] sm:$0xff] }
  0x41   :  { %2478 = vmatprep.mubr.msk.bf16.mxu0 %vm275_vm2, %v2556_v36  ;;  %2510 = vmatprep.mubr.msk.bf16.mxu1 %vm275_vm2, %v2557_v37  ;;  %v841_v55 = vld [vmem:[%s3504_s3 + $0x68] sm:$0xff]  ;;  %v844_v56 = vld [vmem:[%s3504_s3 + $0x80] sm:$0xff]  ;;  %v843_v57 = vld [vmem:[%s3504_s3 + $0x78] sm:$0xff] }
  0x42   :  { %867 = vperm.xlu0 %2523, %v829_v42   ;;  %877 = vperm.xlu1 %2524, %v831_v45   ;;  %v2562_v58 = vld [vmem:[%s3503_s2 + $0x4] ss:$16 sps:$4 sm:$0xff]   ;;  %v2565_v59 = vld [vmem:[%s3503_s2 + $0xc] ss:$16 sps:$4 sm:$0xff]  }
  0x43   :  { %v846_v60 = vld [vmem:[%s3504_s3 + $0x90] sm:$0xff]  ;;  %v845_v61 = vld [vmem:[%s3504_s3 + $0x88] sm:$0xff]  ;;  %v848_v62 = vld [vmem:[%s3504_s3 + $0xa0] sm:$0xff] }
  0x44   :  { %v847_v63 = vld [vmem:[%s3504_s3 + $0x98] sm:$0xff]  ;;  %v850_v0 = vld [vmem:[%s3504_s3 + $0xb0] sm:$0xff]  ;;  %v849_v1 = vld [vmem:[%s3504_s3 + $0xa8] sm:$0xff] }
  0x45   :  { %v1727_v2 = vld [vmem:[%s3505_s4 + $0x8] sm:$0xff]  ;;  %v1726_v3 = vld [vmem:[%s3505_s4] sm:$0xff]  ;;  %v1729_v4 = vld [vmem:[%s3505_s4 + $0x18] sm:$0xff] }
  0x46   :  { %882 = vperm.xlu0 %2523, %v832_v44   ;;  %887 = vperm.xlu1 %2524, %v833_v47   ;;  %v1728_v5 = vld [vmem:[%s3505_s4 + $0x10] sm:$0xff]  ;;  %v1731_v6 = vld [vmem:[%s3505_s4 + $0x28] sm:$0xff]  ;;  %v1730_v7 = vld [vmem:[%s3505_s4 + $0x20] sm:$0xff] }
  0x47   :  { %v1733_v8 = vld [vmem:[%s3505_s4 + $0x38] sm:$0xff]  ;;  %v1732_v9 = vld [vmem:[%s3505_s4 + $0x30] sm:$0xff]  ;;  %v1735_v10 = vld [vmem:[%s3505_s4 + $0x48] sm:$0xff] }
  0x48   :  { %2479 = vmatmul.mubr.msk.bf16.gmra.mrb[28].mxu0 %vm275_vm2, %v2558_v38  ;;  %2511 = vmatmul.mubr.msk.bf16.gmra.mrb[28].mxu1 %vm275_vm2, %v2559_v39  ;;  %v1734_v11 = vld [vmem:[%s3505_s4 + $0x40] sm:$0xff]  ;;  %v1737_v12 = vld [vmem:[%s3505_s4 + $0x58] sm:$0xff]  ;;  %v1736_v13 = vld [vmem:[%s3505_s4 + $0x50] sm:$0xff] }
  0x49   :  { %1372 = vmatprep.mubr.bf16.mxu1 %v2562_v58  ;;  %1533 = vmatprep.mubr.bf16.mxu0 %v2565_v59  ;;  %v1739_v14 = vld [vmem:[%s3505_s4 + $0x68] sm:$0xff]  ;;  %v1738_v15 = vld [vmem:[%s3505_s4 + $0x60] sm:$0xff]  ;;  %v1741_v16 = vld [vmem:[%s3505_s4 + $0x78] sm:$0xff] }
  0x4a   :  { %892 = vperm.xlu0 %2523, %v834_v46   ;;  %897 = vperm.xlu1 %2524, %v835_v49   ;;  %v1740_v17 = vld [vmem:[%s3505_s4 + $0x70] sm:$0xff]  ;;  %v1743_v18 = vld [vmem:[%s3505_s4 + $0x88] sm:$0xff]  ;;  %v1742_v19 = vld [vmem:[%s3505_s4 + $0x80] sm:$0xff] }
  0x4b   :  { %v851_v20 = vld [vmem:[%s3504_s3 + $0xb8] sm:$0xff]  ;;  %v1744_v21 = vld [vmem:[%s3505_s4 + $0x90] sm:$0xff]  ;;  %v852_v22 = vld [vmem:[%s3504_s3 + $0xc0] sm:$0xff] }
  0x4c   :  { %v1745_v23 = vld [vmem:[%s3505_s4 + $0x98] sm:$0xff]  ;;  %v853_v26 = vld [vmem:[%s3504_s3 + $0xc8] sm:$0xff]  ;;  %v1746_v31 = vld [vmem:[%s3505_s4 + $0xa0] sm:$0xff] }
  0x4d   :  { %v854_v38 = vld [vmem:[%s3504_s3 + $0xd0] sm:$0xff]  ;;  %v1747_v39 = vld [vmem:[%s3505_s4 + $0xa8] sm:$0xff]  ;;  %v855_v42 = vld [vmem:[%s3504_s3 + $0xd8] sm:$0xff] }
  0x4e   :  { %902 = vperm.xlu0 %2523, %v836_v48   ;;  %907 = vperm.xlu1 %2524, %v837_v51   ;;  %v1748_v47 = vld [vmem:[%s3505_s4 + $0xb0] sm:$0xff]  ;;  %v857_v58 = vld [vmem:[%s3504_s3 + $0xe8] sm:$0xff] }
  0x52   :  { %912 = vperm.xlu0 %2523, %v838_v50   ;;  %917 = vperm.xlu1 %2524, %v839_v53  }
  0x56   :  { %922 = vperm.xlu0 %2523, %v840_v52   ;;  %927 = vperm.xlu1 %2524, %v841_v55   ;;  %v1749_v55 = vld [vmem:[%s3505_s4 + $0xb8] sm:$0xff] }
  0x5a   :  { %932 = vperm.xlu0 %2523, %v842_v54   ;;  %937 = vperm.xlu1 %2524, %v843_v57   ;;  %v856_v54 = vld [vmem:[%s3504_s3 + $0xe0] sm:$0xff] }
  0x5e   :  { %942 = vperm.xlu0 %2523, %v844_v56   ;;  %947 = vperm.xlu1 %2524, %v845_v61  }
  0x62   :  { %952 = vperm.xlu0 %2523, %v846_v60   ;;  %957 = vperm.xlu1 %2524, %v847_v63   ;;  %v1750_v63 = vld [vmem:[%s3505_s4 + $0xc0] sm:$0xff] }
  0x66   :  { %962 = vperm.xlu0 %2523, %v848_v62   ;;  %967 = vperm.xlu1 %2524, %v849_v1  }
  0x6a   :  { %972 = vperm.xlu0 %2523, %v850_v0   ;;  %1760 = vperm.xlu1 %2524, %v1726_v3  }
  0x6e   :  { %1765 = vperm.xlu0 %2523, %v1727_v2   ;;  %1770 = vperm.xlu1 %2524, %v1728_v5  }
  0x72   :  { %1775 = vperm.xlu0 %2523, %v1729_v4   ;;  %1780 = vperm.xlu1 %2524, %v1730_v7   ;;  %v1751_v7 = vld [vmem:[%s3505_s4 + $0xc8] sm:$0xff] }
  0x76   :  { %1785 = vperm.xlu0 %2523, %v1731_v6   ;;  %1790 = vperm.xlu1 %2524, %v1732_v9   ;;  %v858_v6 = vld [vmem:[%s3504_s3 + $0xf0] sm:$0xff] }
  0x7a   :  { %1795 = vperm.xlu0 %2523, %v1733_v8   ;;  %1800 = vperm.xlu1 %2524, %v1734_v11  }
  0x7e   :  { %1805 = vperm.xlu0 %2523, %v1735_v10   ;;  %1810 = vperm.xlu1 %2524, %v1736_v13   ;;  %v859_v10 = vld [vmem:[%s3504_s3 + $0xf8] sm:$0xff] }
  0x82   :  { %1815 = vperm.xlu0 %2523, %v1737_v12   ;;  %1820 = vperm.xlu1 %2524, %v1738_v15   ;;  %v1752_v15 = vld [vmem:[%s3505_s4 + $0xd0] sm:$0xff] }
  0x86   :  { %1825 = vperm.xlu0 %2523, %v1739_v14   ;;  %1830 = vperm.xlu1 %2524, %v1740_v17  }
  0x8a   :  { %1835 = vperm.xlu0 %2523, %v1741_v16   ;;  %1840 = vperm.xlu1 %2524, %v1742_v19  }
  0x8e   :  { %1845 = vperm.xlu0 %2523, %v1743_v18   ;;  %1850 = vperm.xlu1 %2524, %v1744_v21  }
  0x92   :  { %977 = vperm.xlu0 %2523, %v851_v20   ;;  %1855 = vperm.xlu1 %2524, %v1745_v23   ;;  %v1753_v23 = vld [vmem:[%s3505_s4 + $0xd8] sm:$0xff] }
  0x96   :  { %982 = vperm.xlu0 %2523, %v852_v22   ;;  %1860 = vperm.xlu1 %2524, %v1746_v31   ;;  %v1754_v22 = vld [vmem:[%s3505_s4 + $0xe0] sm:$0xff]  ;;  %v1755_v31 = vld [vmem:[%s3505_s4 + $0xe8] sm:$0xff] }
  0x9a   :  { %987 = vperm.xlu0 %2523, %v853_v26   ;;  %1865 = vperm.xlu1 %2524, %v1747_v39   ;;  %v1756_v26 = vld [vmem:[%s3505_s4 + $0xf0] sm:$0xff] }
  0x9e   :  { %992 = vperm.xlu0 %2523, %v854_v38   ;;  %1870 = vperm.xlu1 %2524, %v1748_v47  }
  0xa2   :  { %997 = vperm.xlu0 %2523, %v855_v42   ;;  %1875 = vperm.xlu1 %2524, %v1749_v55  }
  0xa6   :  { %1002 = vperm.xlu0 %2523, %v856_v54   ;;  %1880 = vperm.xlu1 %2524, %v1750_v63  }
  0xaa   :  { %1007 = vperm.xlu0 %2523, %v857_v58   ;;  %1885 = vperm.xlu1 %2524, %v1751_v7  }
  0xae   :  { %1012 = vperm.xlu0 %2523, %v858_v6   ;;  %1890 = vperm.xlu1 %2524, %v1752_v15  }
  0xb2   :  { %1017 = vperm.xlu0 %2523, %v859_v10   ;;  %1895 = vperm.xlu1 %2524, %v1753_v23  }
  0xb6   :  { %1900 = vperm.xlu0 %2523, %v1754_v22   ;;  %1905 = vperm.xlu1 %2524, %v1755_v31  }
  0xba   :  { %1910 = vperm.xlu0 %2523, %v1756_v26  }
  0xe3   :  { %v2452_v24 = vpop.f32.mrb[0].mxu0  ;;  %v2484_v25 = vpop.f32.mrb[0].mxu1 }
  0xe4   :  { %v413_v27 = vpop.f32.mrb[1].mxu0  ;;  %v541_v28 = vpop.f32.mrb[1].mxu1 }
  0xe5   :  { %v2453_v29 = vpop.f32.mrb[2].mxu0  ;;  %v2485_v30 = vpop.f32.mrb[2].mxu1 }
  0xe6   :  { %v3009_v32 = vpack.c.bf16 %v2453_v29, %v2452_v24  ;;  %v3011_v33 = vpack.c.bf16 %v2485_v30, %v2484_v25  ;;  %v416_v34 = vpop.f32.mrb[3].mxu0  ;;  %v544_v35 = vpop.f32.mrb[3].mxu1 }
  0xe7   :  { %v3013_v36 = vpack.c.bf16 %v416_v34, %v413_v27  ;;  %v3015_v37 = vpack.c.bf16 %v544_v35, %v541_v28 }
  0xe8   :  { %v701_v54 = vmul.bf16 1045249613, %v3009_v32 }
  0xeb   :  { %v2456_v40 = vpop.f32.mrb[4].mxu0  ;;  %v2488_v41 = vpop.f32.mrb[4].mxu1 }
  0xec   :  { %v429_v43 = vpop.f32.mrb[5].mxu0  ;;  %v557_v44 = vpop.f32.mrb[5].mxu1 }
  0xed   :  { %v2457_v45 = vpop.f32.mrb[6].mxu0  ;;  %v2489_v46 = vpop.f32.mrb[6].mxu1 }
  0xee   :  { %v3029_v48 = vpack.c.bf16 %v2457_v45, %v2456_v40  ;;  %v3031_v49 = vpack.c.bf16 %v2489_v46, %v2488_v41  ;;  %v432_v50 = vpop.f32.mrb[7].mxu0  ;;  %v560_v51 = vpop.f32.mrb[7].mxu1  ;;  %v700_v40 = vmul.bf16 1045249613, %v3013_v36 }
  0xef   :  { %v3033_v52 = vpack.c.bf16 %v432_v50, %v429_v43  ;;  %v3035_v53 = vpack.c.bf16 %v560_v51, %v557_v44  ;;  %v2020_v43 = vld [vmem:[#allocation2] sm:$0x1]  ;;  %v716_v44 = vmul.bf16 1045249613, %v3015_v37  ;;  %v1757_v51 = vld [vmem:[%s3505_s4 + $0xf8] sm:$0xff] }
  0xf0   :  { %2023 = vperm.xlu0 %2523, %v2020_v43   ;;  %1915 = vperm.xlu1 %2524, %v1757_v51  }
  0xf1   :  { %v718_v15 = vmul.bf16 1045249613, %v3035_v53 }
  0xf3   :  { %v2460_v56 = vpop.f32.mrb[8].mxu0  ;;  %v2492_v57 = vpop.f32.mrb[8].mxu1 }
  0xf4   :  { %v445_v59 = vpop.f32.mrb[9].mxu0  ;;  %v573_v60 = vpop.f32.mrb[9].mxu1 }
  0xf5   :  { %v2461_v61 = vpop.f32.mrb[10].mxu0  ;;  %v2493_v62 = vpop.f32.mrb[10].mxu1 }
  0xf6   :  { %v3049_v0 = vpack.c.bf16 %v2461_v61, %v2460_v56  ;;  %v3051_v1 = vpack.c.bf16 %v2493_v62, %v2492_v57  ;;  %v448_v2 = vpop.f32.mrb[11].mxu0  ;;  %v576_v3 = vpop.f32.mrb[11].mxu1  ;;  %v748_v61 = vmax.bf16 %v716_v44, %v3015_v37 }
  0xf7   :  { %v3053_v4 = vpack.c.bf16 %v448_v2, %v445_v59  ;;  %v3055_v5 = vpack.c.bf16 %v576_v3, %v573_v60  ;;  %v717_v59 = vmul.bf16 1045249613, %v3011_v33  ;;  %v732_v60 = vmax.bf16 %v700_v40, %v3013_v36 }
  0xf9   :  { %v749_v37 = vmax.bf16 %v717_v59, %v3011_v33 }
  0xfb   :  { %v2464_v8 = vpop.f32.mrb[12].mxu0  ;;  %v2496_v9 = vpop.f32.mrb[12].mxu1 }
  0xfc   :  { %v461_v11 = vpop.f32.mrb[13].mxu0  ;;  %v589_v12 = vpop.f32.mrb[13].mxu1 }
  0xfd   :  { %v2465_v13 = vpop.f32.mrb[14].mxu0  ;;  %v2497_v14 = vpop.f32.mrb[14].mxu1 }
  0xfe   :  { %v3069_v16 = vpack.c.bf16 %v2465_v13, %v2464_v8  ;;  %v3071_v17 = vpack.c.bf16 %v2497_v14, %v2496_v9  ;;  %v464_v18 = vpop.f32.mrb[15].mxu0  ;;  %v592_v19 = vpop.f32.mrb[15].mxu1  ;;  %v702_v14 = vmul.bf16 1045249613, %v3033_v52 }
  0xff   :  { %v3073_v20 = vpack.c.bf16 %v464_v18, %v461_v11  ;;  %v3075_v21 = vpack.c.bf16 %v592_v19, %v589_v12  ;;  %v733_v12 = vmax.bf16 %v701_v54, %v3009_v32 }
 0x100   :  { %v734_v33 = vmax.bf16 %v702_v14, %v3033_v52 }
 0x103   :  { %v2468_v24 = vpop.f32.mrb[16].mxu0  ;;  %v2500_v25 = vpop.f32.mrb[16].mxu1 }
 0x104   :  { %v477_v27 = vpop.f32.mrb[17].mxu0  ;;  %v605_v28 = vpop.f32.mrb[17].mxu1 }
 0x105   :  { %v2469_v29 = vpop.f32.mrb[18].mxu0  ;;  %v2501_v30 = vpop.f32.mrb[18].mxu1 }
 0x106   :  { %v677_v34 = vpack.c.bf16 %v2469_v29, %v2468_v24  ;;  %v693_v35 = vpack.c.bf16 %v2501_v30, %v2500_v25  ;;  %v480_v38 = vpop.f32.mrb[19].mxu0  ;;  %v608_v39 = vpop.f32.mrb[19].mxu1  ;;  %v703_v24 = vmul.bf16 1045249613, %v3029_v48  ;;  %v750_v29 = vmax.bf16 %v718_v15, %v3035_v53 }
 0x107   :  { %v676_v41 = vpack.c.bf16 %v480_v38, %v477_v27  ;;  %v692_v42 = vpack.c.bf16 %v608_v39, %v605_v28  ;;  %v719_v28 = vmul.bf16 1045249613, %v3031_v49 }
 0x108   :  { %v709_v45 = vmul.bf16 1045249613, %v677_v34  ;;  %v725_v46 = vmul.bf16 1045249613, %v693_v35  ;;  %v735_v44 = vmax.bf16 %v703_v24, %v3029_v48  ;;  %v723_v24 = vmul.bf16 1045249613, %v3071_v17 }
 0x109   :  { %v708_v47 = vmul.bf16 1045249613, %v676_v41  ;;  %v724_v50 = vmul.bf16 1045249613, %v692_v42  ;;  %v751_v53 = vmax.bf16 %v719_v28, %v3031_v49 }
 0x10a   :  { %v741_v2 = vmax.bf16 %v709_v45, %v677_v34  ;;  %v757_v3 = vmax.bf16 %v725_v46, %v693_v35  ;;  %v704_v46 = vmul.bf16 1045249613, %v3053_v4  ;;  %v755_v28 = vmax.bf16 %v723_v24, %v3071_v17  ;;  %v2568_v17 = vld [vmem:[%s3503_s2 + $0x20] ss:$16 sps:$4 sm:$0xff]   ;;  %v2649_v24 = vld [vmem:[%s3503_s2 + $0x1c8] ss:$16 sps:$4 sm:$0xff]  }
 0x10b   :  { %v740_v55 = vmax.bf16 %v708_v47, %v676_v41  ;;  %v756_v56 = vmax.bf16 %v724_v50, %v692_v42  ;;  %v2472_v57 = vpop.f32.mrb[20].mxu0  ;;  %v2504_v58 = vpop.f32.mrb[20].mxu1  ;;  %v720_v47 = vmul.bf16 1045249613, %v3055_v5 }
 0x10c   :  { %v493_v62 = vpop.f32.mrb[21].mxu0  ;;  %v621_v63 = vpop.f32.mrb[21].mxu1  ;;  %v736_v49 = vmax.bf16 %v704_v46, %v3053_v4  ;;  %v2592_v46 = vld [vmem:[%s3503_s2 + $0xa0] ss:$16 sps:$4 sm:$0xff]  }
 0x10d   :  { %v2473_v6 = vpop.f32.mrb[22].mxu0  ;;  %v2505_v7 = vpop.f32.mrb[22].mxu1  ;;  %2220 = vmatprep.subr.bf16.mxu1 %v740_v55  ;;  %2332 = vmatprep.subr.bf16.mxu0 %v756_v56  ;;  %v705_v56 = vmul.bf16 1045249613, %v3049_v0 }
 0x10e   :  { %v679_v8 = vpack.c.bf16 %v2473_v6, %v2472_v57  ;;  %v695_v9 = vpack.c.bf16 %v2505_v7, %v2504_v58  ;;  %v496_v10 = vpop.f32.mrb[23].mxu0  ;;  %v624_v11 = vpop.f32.mrb[23].mxu1  ;;  %2221 = vmatpush3.bf16.msra.mxu1 %v732_v60  ;;  %2333 = vmatpush3.bf16.msra.mxu0 %v748_v61  ;;  %v721_v60 = vmul.bf16 1045249613, %v3051_v1  ;;  %v752_v61 = vmax.bf16 %v720_v47, %v3055_v5  ;;  %v2595_v47 = vld [vmem:[%s3503_s2 + $0xa8] ss:$16 sps:$4 sm:$0xff]  }
 0x10f   :  { %v678_v13 = vpack.c.bf16 %v496_v10, %v493_v62  ;;  %v694_v36 = vpack.c.bf16 %v624_v11, %v621_v63  ;;  %2222 = vmatprep.subr.bf16.mxu1 %v741_v2  ;;  %2334 = vmatprep.subr.bf16.mxu0 %v757_v3 }
 0x110   :  { %v711_v18 = vmul.bf16 1045249613, %v679_v8  ;;  %v727_v19 = vmul.bf16 1045249613, %v695_v9  ;;  %v753_v5 = vmax.bf16 %v721_v60, %v3051_v1  ;;  %v2611_v60 = vld [vmem:[%s3503_s2 + $0x10c] ss:$16 sps:$4 sm:$0xff]  }
 0x111   :  { %v710_v22 = vmul.bf16 1045249613, %v678_v13  ;;  %v726_v23 = vmul.bf16 1045249613, %v694_v36 }
 0x112   :  { %2223 = vmatpush3.bf16.msra.mxu1 %v733_v12  ;;  %2335 = vmatpush3.bf16.msra.mxu0 %v749_v37  ;;  %v743_v34 = vmax.bf16 %v711_v18, %v679_v8  ;;  %v759_v35 = vmax.bf16 %v727_v19, %v695_v9  ;;  %v737_v12 = vmax.bf16 %v705_v56, %v3049_v0  ;;  %v722_v37 = vmul.bf16 1045249613, %v3075_v21  ;;  %v2602_v56 = vld [vmem:[%s3503_s2 + $0xe4] ss:$16 sps:$4 sm:$0xff]  }
 0x113   :  { %v742_v25 = vmax.bf16 %v710_v22, %v678_v13  ;;  %v758_v32 = vmax.bf16 %v726_v23, %v694_v36  ;;  %v2476_v26 = vpop.f32.mrb[24].mxu0  ;;  %v2508_v27 = vpop.f32.mrb[24].mxu1  ;;  %v706_v36 = vmul.bf16 1045249613, %v3073_v20  ;;  %v707_v0 = vmul.bf16 1045249613, %v3069_v16 }
 0x114   :  { %v509_v30 = vpop.f32.mrb[25].mxu0  ;;  %v637_v31 = vpop.f32.mrb[25].mxu1  ;;  %v754_v1 = vmax.bf16 %v722_v37, %v3075_v21  ;;  %v2566_v21 = vld [vmem:[%s3503_s2 + $0x24] ss:$16 sps:$4 sm:$0xff]   ;;  %v2637_v37 = vld [vmem:[%s3503_s2 + $0x188] ss:$16 sps:$4 sm:$0xff]  }
 0x115   :  { %v2477_v38 = vpop.f32.mrb[26].mxu0  ;;  %v2509_v39 = vpop.f32.mrb[26].mxu1  ;;  %2224 = vmatprep.subr.bf16.mxu1 %v742_v25  ;;  %2336 = vmatprep.subr.bf16.mxu0 %v758_v32  ;;  %v738_v25 = vmax.bf16 %v706_v36, %v3073_v20  ;;  %v2563_v20 = vld [vmem:[%s3503_s2 + $0x8] ss:$16 sps:$4 sm:$0xff]   ;;  %v2634_v36 = vld [vmem:[%s3503_s2 + $0x180] ss:$16 sps:$4 sm:$0xff]  }
 0x116   :  { %v681_v40 = vpack.c.bf16 %v2477_v38, %v2476_v26  ;;  %v697_v41 = vpack.c.bf16 %v2509_v39, %v2508_v27  ;;  %v512_v42 = vpop.f32.mrb[27].mxu0  ;;  %v640_v43 = vpop.f32.mrb[27].mxu1  ;;  %2225 = vmatpush3.bf16.msra.mxu1 %v734_v33  ;;  %2337 = vmatpush3.bf16.msra.mxu0 %v750_v29  ;;  %v739_v27 = vmax.bf16 %v707_v0, %v3069_v16  ;;  %v2560_v33 = vld [vmem:[%s3503_s2] ss:$16 sps:$4 sm:$0xff]   ;;  %v2569_v16 = vld [vmem:[%s3503_s2 + $0x2c] ss:$16 sps:$4 sm:$0xff]  }
 0x117   :  { %v680_v45 = vpack.c.bf16 %v512_v42, %v509_v30  ;;  %v696_v52 = vpack.c.bf16 %v640_v43, %v637_v31  ;;  %2226 = vmatprep.subr.bf16.mxu1 %v743_v34  ;;  %2338 = vmatprep.subr.bf16.mxu0 %v759_v35  ;;  %v2571_v29 = vld [vmem:[%s3503_s2 + $0x28] ss:$16 sps:$4 sm:$0xff]   ;;  %v2572_v30 = vld [vmem:[%s3503_s2 + $0x44] ss:$16 sps:$4 sm:$0xff]   ;;  %v2575_v31 = vld [vmem:[%s3503_s2 + $0x4c] ss:$16 sps:$4 sm:$0xff]  }
 0x118   :  { %v713_v50 = vmul.bf16 1045249613, %v681_v40  ;;  %v729_v51 = vmul.bf16 1045249613, %v697_v41  ;;  %v2574_v34 = vld [vmem:[%s3503_s2 + $0x40] ss:$16 sps:$4 sm:$0xff]  }
 0x119   :  { %v712_v54 = vmul.bf16 1045249613, %v680_v45  ;;  %v728_v55 = vmul.bf16 1045249613, %v696_v52  ;;  %v2577_v35 = vld [vmem:[%s3503_s2 + $0x48] ss:$16 sps:$4 sm:$0xff]  }
 0x11a   :  { %2227 = vmatpush3.bf16.msra.mxu1 %v735_v44  ;;  %2339 = vmatpush3.bf16.msra.mxu0 %v751_v53  ;;  %v745_v2 = vmax.bf16 %v713_v50, %v681_v40  ;;  %v761_v3 = vmax.bf16 %v729_v51, %v697_v41  ;;  %v2578_v38 = vld [vmem:[%s3503_s2 + $0x64] ss:$16 sps:$4 sm:$0xff]   ;;  %v2581_v39 = vld [vmem:[%s3503_s2 + $0x6c] ss:$16 sps:$4 sm:$0xff]   ;;  %v2580_v40 = vld [vmem:[%s3503_s2 + $0x60] ss:$16 sps:$4 sm:$0xff]  }
 0x11b   :  { %v744_v57 = vmax.bf16 %v712_v54, %v680_v45  ;;  %v760_v48 = vmax.bf16 %v728_v55, %v696_v52  ;;  %v2480_v58 = vpop.f32.mrb[28].mxu0  ;;  %v2512_v59 = vpop.f32.mrb[28].mxu1  ;;  %v2583_v41 = vld [vmem:[%s3503_s2 + $0x68] ss:$16 sps:$4 sm:$0xff]   ;;  %v2584_v42 = vld [vmem:[%s3503_s2 + $0x84] ss:$16 sps:$4 sm:$0xff]  }
 0x11c   :  { %v525_v62 = vpop.f32.mrb[29].mxu0  ;;  %v653_v63 = vpop.f32.mrb[29].mxu1  ;;  %v2587_v43 = vld [vmem:[%s3503_s2 + $0x8c] ss:$16 sps:$4 sm:$0xff]   ;;  %v2586_v44 = vld [vmem:[%s3503_s2 + $0x80] ss:$16 sps:$4 sm:$0xff]  }
 0x11d   :  { %v2481_v6 = vpop.f32.mrb[30].mxu0  ;;  %v2513_v7 = vpop.f32.mrb[30].mxu1  ;;  %2228 = vmatprep.subr.bf16.mxu1 %v744_v57  ;;  %2340 = vmatprep.subr.bf16.mxu0 %v760_v48  ;;  %v2589_v45 = vld [vmem:[%s3503_s2 + $0x88] ss:$16 sps:$4 sm:$0xff]   ;;  %v2590_v52 = vld [vmem:[%s3503_s2 + $0xa4] ss:$16 sps:$4 sm:$0xff]  }
 0x11e   :  { %v683_v8 = vpack.c.bf16 %v2481_v6, %v2480_v58  ;;  %v699_v9 = vpack.c.bf16 %v2513_v7, %v2512_v59  ;;  %v528_v10 = vpop.f32.mrb[31].mxu0  ;;  %v656_v11 = vpop.f32.mrb[31].mxu1  ;;  %2229 = vmatpush3.bf16.msra.mxu1 %v736_v49  ;;  %2341 = vmatpush3.bf16.msra.mxu0 %v752_v61  ;;  %v2593_v53 = vld [vmem:[%s3503_s2 + $0xac] ss:$16 sps:$4 sm:$0xff]   ;;  %v2596_v50 = vld [vmem:[%s3503_s2 + $0xc4] ss:$16 sps:$4 sm:$0xff]  }
 0x11f   :  { %v682_v13 = vpack.c.bf16 %v528_v10, %v525_v62  ;;  %v698_v4 = vpack.c.bf16 %v656_v11, %v653_v63  ;;  %2230 = vmatprep.subr.bf16.mxu1 %v745_v2  ;;  %2342 = vmatprep.subr.bf16.mxu0 %v761_v3  ;;  %v2599_v51 = vld [vmem:[%s3503_s2 + $0xcc] ss:$16 sps:$4 sm:$0xff]   ;;  %v2598_v54 = vld [vmem:[%s3503_s2 + $0xc0] ss:$16 sps:$4 sm:$0xff]   ;;  %v2601_v55 = vld [vmem:[%s3503_s2 + $0xc8] ss:$16 sps:$4 sm:$0xff]  }
 0x120   :  { %v715_v14 = vmul.bf16 1045249613, %v683_v8  ;;  %v731_v15 = vmul.bf16 1045249613, %v699_v9  ;;  %v2605_v57 = vld [vmem:[%s3503_s2 + $0xec] ss:$16 sps:$4 sm:$0xff]  }
 0x121   :  { %v714_v18 = vmul.bf16 1045249613, %v682_v13  ;;  %v730_v19 = vmul.bf16 1045249613, %v698_v4  ;;  %v2604_v48 = vld [vmem:[%s3503_s2 + $0xe0] ss:$16 sps:$4 sm:$0xff]  }
 0x122   :  { %2231 = vmatpush3.bf16.msra.mxu1 %v737_v12  ;;  %2343 = vmatpush3.bf16.msra.mxu0 %v753_v5  ;;  %v747_v32 = vmax.bf16 %v715_v14, %v683_v8  ;;  %v763_v26 = vmax.bf16 %v731_v15, %v699_v9  ;;  %v2607_v58 = vld [vmem:[%s3503_s2 + $0xe8] ss:$16 sps:$4 sm:$0xff]   ;;  %v2608_v59 = vld [vmem:[%s3503_s2 + $0x104] ss:$16 sps:$4 sm:$0xff]   ;;  %v2610_v49 = vld [vmem:[%s3503_s2 + $0x100] ss:$16 sps:$4 sm:$0xff]  }
 0x123   :  { %v746_v22 = vmax.bf16 %v714_v18, %v682_v13  ;;  %v762_v23 = vmax.bf16 %v730_v19, %v698_v4  ;;  %v2613_v61 = vld [vmem:[%s3503_s2 + $0x108] ss:$16 sps:$4 sm:$0xff]   ;;  %v2614_v62 = vld [vmem:[%s3503_s2 + $0x124] ss:$16 sps:$4 sm:$0xff]   ;;  %v2617_v63 = vld [vmem:[%s3503_s2 + $0x12c] ss:$16 sps:$4 sm:$0xff]  }
 0x124   :  { %v2616_v2 = vld [vmem:[%s3503_s2 + $0x120] ss:$16 sps:$4 sm:$0xff]   ;;  %v2619_v3 = vld [vmem:[%s3503_s2 + $0x128] ss:$16 sps:$4 sm:$0xff]   ;;  %v2620_v6 = vld [vmem:[%s3503_s2 + $0x144] ss:$16 sps:$4 sm:$0xff]  }
 0x125   :  { %2232 = vmatprep.subr.bf16.mxu1 %v746_v22  ;;  %2344 = vmatprep.subr.bf16.mxu0 %v762_v23  ;;  %v2623_v7 = vld [vmem:[%s3503_s2 + $0x14c] ss:$16 sps:$4 sm:$0xff]   ;;  %v2622_v8 = vld [vmem:[%s3503_s2 + $0x140] ss:$16 sps:$4 sm:$0xff]   ;;  %v2625_v9 = vld [vmem:[%s3503_s2 + $0x148] ss:$16 sps:$4 sm:$0xff]  }
 0x126   :  { %2233 = vmatpush3.bf16.msra.mxu1 %v738_v25  ;;  %2345 = vmatpush3.bf16.msra.mxu0 %v754_v1  ;;  %v2626_v10 = vld [vmem:[%s3503_s2 + $0x164] ss:$16 sps:$4 sm:$0xff]   ;;  %v2629_v11 = vld [vmem:[%s3503_s2 + $0x16c] ss:$16 sps:$4 sm:$0xff]   ;;  %v2628_v12 = vld [vmem:[%s3503_s2 + $0x160] ss:$16 sps:$4 sm:$0xff]  }
 0x127   :  { %2234 = vmatprep.subr.bf16.mxu1 %v747_v32  ;;  %2346 = vmatprep.subr.bf16.mxu0 %v763_v26  ;;  %v2631_v13 = vld [vmem:[%s3503_s2 + $0x168] ss:$16 sps:$4 sm:$0xff]   ;;  %v2632_v4 = vld [vmem:[%s3503_s2 + $0x184] ss:$16 sps:$4 sm:$0xff]   ;;  %v2635_v5 = vld [vmem:[%s3503_s2 + $0x18c] ss:$16 sps:$4 sm:$0xff]  }
 0x128   :  { %v2638_v14 = vld [vmem:[%s3503_s2 + $0x1a4] ss:$16 sps:$4 sm:$0xff]   ;;  %v2641_v15 = vld [vmem:[%s3503_s2 + $0x1ac] ss:$16 sps:$4 sm:$0xff]   ;;  %v2640_v18 = vld [vmem:[%s3503_s2 + $0x1a0] ss:$16 sps:$4 sm:$0xff]  }
 0x129   :  { %v2643_v19 = vld [vmem:[%s3503_s2 + $0x1a8] ss:$16 sps:$4 sm:$0xff]   ;;  %v2644_v22 = vld [vmem:[%s3503_s2 + $0x1c4] ss:$16 sps:$4 sm:$0xff]   ;;  %v2647_v23 = vld [vmem:[%s3503_s2 + $0x1cc] ss:$16 sps:$4 sm:$0xff]  }
 0x12a   :  { %2235 = vmatpush3.bf16.msra.mxu1 %v739_v27  ;;  %2347 = vmatpush3.bf16.msra.mxu0 %v755_v28  ;;  %v2646_v0 = vld [vmem:[%s3503_s2 + $0x1c0] ss:$16 sps:$4 sm:$0xff]   ;;  %v2650_v25 = vld [vmem:[%s3503_s2 + $0x1e4] ss:$16 sps:$4 sm:$0xff]   ;;  %v2653_v1 = vld [vmem:[%s3503_s2 + $0x1ec] ss:$16 sps:$4 sm:$0xff]   ;;  %v863_v27 = vpop.permute.xlu0 %862 }
 0x12b   :  { %v2652_v32 = vld [vmem:[%s3503_s2 + $0x1e0] ss:$16 sps:$4 sm:$0xff]   ;;  %v2655_v26 = vld [vmem:[%s3503_s2 + $0x1e8] ss:$16 sps:$4 sm:$0xff]   ;;  %s2686_s2 = smov [#allocation3]  }
 0x12c   :  { %s2045_s18 = sshll.u32 %s2686_s2, 4  ;;  %s2046_s18 = int_to_ptr.vmem [resolvable:$true] %s2045_s18 }
 0x12d   :  { %1373 = vmatmul.mubr.bf16.vlgmr.msra.gmra.mrb[32].mxu1 %v2560_v33  ;;  %1534 = vmatmul.mubr.bf16.vlgmr.msra.gmra.mrb[32].mxu0 %v2563_v20  ;;  %v873_v33 = vpop.permute.xlu1 %872  ;;  %s2660_s19 = scalar_lea.vmem %s2046_s18, 16  ;;  %s2664_s20 = scalar_lea.vmem %s2046_s18, 32 }
 0x12e   :  { %1380 = vmatprep.mubr.bf16.mxu1 %v2566_v21  ;;  %1541 = vmatprep.mubr.bf16.mxu0 %v2569_v16  ;;  %v868_v28 = vpop.permute.xlu0 %867  ;;  %p2661_p0 = scmp.ne.s32.totalorder %s2046_s18, %s2660_s19  ;;  %p2665_p1 = scmp.lt.s32.totalorder %s2046_s18, %s2046_s18 }
 0x12f   :  { %p2666_p2 = scmp.lt.s32.totalorder %s2664_s20, %s2660_s19 }
 0x131   :  { %v3312_v21 = vpop.permute.xlu1 %877  ;;  %p2667_p3 = por %p2666_p2, %p2665_p1 }
 0x132   :  { %v3310_v20 = vpop.permute.xlu0 %882 }
 0x133   :  { %p2668_p4 = pnand %p2667_p3, %p2661_p0 }
 0x135   :  { %1381 = vmatmul.mubr.bf16.gmra.mrb[36].mxu1 %v2568_v17  ;;  %1542 = vmatmul.mubr.bf16.gmra.mrb[36].mxu0 %v2571_v29  ;;  %v3316_v17 = vpop.permute.xlu1 %887 }
 0x136   :  { %1388 = vmatprep.mubr.bf16.mxu1 %v2572_v30  ;;  %1549 = vmatprep.mubr.bf16.mxu0 %v2575_v31  ;;  %v3314_v16 = vpop.permute.xlu0 %892 }
 0x139   :  { %v3320_v30 = vpop.permute.xlu1 %897 }
 0x13a   :  { %v3318_v29 = vpop.permute.xlu0 %902 }
 0x13d   :  { %1389 = vmatmul.mubr.bf16.gmra.mrb[40].mxu1 %v2574_v34  ;;  %1550 = vmatmul.mubr.bf16.gmra.mrb[40].mxu0 %v2577_v35  ;;  %v3324_v34 = vpop.permute.xlu1 %907 }
 0x13e   :  { %1396 = vmatprep.mubr.bf16.mxu1 %v2578_v38  ;;  %1557 = vmatprep.mubr.bf16.mxu0 %v2581_v39  ;;  %v3322_v31 = vpop.permute.xlu0 %912 }
 0x141   :  { %v3328_v38 = vpop.permute.xlu1 %917 }
 0x142   :  { %v3326_v35 = vpop.permute.xlu0 %922 }
 0x145   :  { %1397 = vmatmul.mubr.bf16.gmra.mrb[44].mxu1 %v2580_v40  ;;  %1558 = vmatmul.mubr.bf16.gmra.mrb[44].mxu0 %v2583_v41  ;;  %v3332_v40 = vpop.permute.xlu1 %927 }
 0x146   :  { %1404 = vmatprep.mubr.bf16.mxu1 %v2584_v42  ;;  %1565 = vmatprep.mubr.bf16.mxu0 %v2587_v43  ;;  %v3330_v39 = vpop.permute.xlu0 %932 }
 0x149   :  { %v3336_v42 = vpop.permute.xlu1 %937 }
 0x14a   :  { %v3334_v41 = vpop.permute.xlu0 %942 }
 0x14d   :  { %1405 = vmatmul.mubr.bf16.gmra.mrb[48].mxu1 %v2586_v44  ;;  %1566 = vmatmul.mubr.bf16.gmra.mrb[48].mxu0 %v2589_v45  ;;  %v3340_v44 = vpop.permute.xlu1 %947 }
 0x14e   :  { %1412 = vmatprep.mubr.bf16.mxu1 %v2590_v52  ;;  %1573 = vmatprep.mubr.bf16.mxu0 %v2593_v53  ;;  %v3338_v43 = vpop.permute.xlu0 %952 }
 0x151   :  { %v3344_v52 = vpop.permute.xlu1 %957 }
 0x152   :  { %v3342_v45 = vpop.permute.xlu0 %962 }
 0x155   :  { %1413 = vmatmul.mubr.bf16.gmra.mrb[52].mxu1 %v2592_v46  ;;  %1574 = vmatmul.mubr.bf16.gmra.mrb[52].mxu0 %v2595_v47  ;;  %v3348_v46 = vpop.permute.xlu1 %967 }
 0x156   :  { %1420 = vmatprep.mubr.bf16.mxu1 %v2596_v50  ;;  %1581 = vmatprep.mubr.bf16.mxu0 %v2599_v51  ;;  %v3346_v53 = vpop.permute.xlu0 %972 }
 0x159   :  { %v1761_v50 = vpop.permute.xlu1 %1760 }
 0x15a   :  { %v1766_v47 = vpop.permute.xlu0 %1765 }
 0x15d   :  { %1421 = vmatmul.mubr.bf16.gmra.mrb[56].mxu1 %v2598_v54  ;;  %1582 = vmatmul.mubr.bf16.gmra.mrb[56].mxu0 %v2601_v55  ;;  %v3352_v54 = vpop.permute.xlu1 %1770 }
 0x15e   :  { %1428 = vmatprep.mubr.bf16.mxu1 %v2602_v56  ;;  %1589 = vmatprep.mubr.bf16.mxu0 %v2605_v57  ;;  %v3350_v51 = vpop.permute.xlu0 %1775 }
 0x161   :  { %v3356_v56 = vpop.permute.xlu1 %1780 }
 0x162   :  { %v3354_v55 = vpop.permute.xlu0 %1785 }
 0x165   :  { %1429 = vmatmul.mubr.bf16.gmra.mrb[60].mxu1 %v2604_v48  ;;  %1590 = vmatmul.mubr.bf16.gmra.mrb[60].mxu0 %v2607_v58  ;;  %v3360_v48 = vpop.permute.xlu1 %1790 }
 0x166   :  { %1436 = vmatprep.mubr.bf16.mxu1 %v2608_v59  ;;  %1597 = vmatprep.mubr.bf16.mxu0 %v2611_v60  ;;  %v3358_v57 = vpop.permute.xlu0 %1795 }
 0x16d   :  { %1437 = vmatmul.mubr.bf16.gmra.mrb[64].mxu1 %v2610_v49  ;;  %1598 = vmatmul.mubr.bf16.gmra.mrb[64].mxu0 %v2613_v61 }
 0x16e   :  { %1444 = vmatprep.mubr.bf16.mxu1 %v2614_v62  ;;  %1605 = vmatprep.mubr.bf16.mxu0 %v2617_v63 }
 0x175   :  { %1445 = vmatmul.mubr.bf16.gmra.mrb[68].mxu1 %v2616_v2  ;;  %1606 = vmatmul.mubr.bf16.gmra.mrb[68].mxu0 %v2619_v3 }
 0x176   :  { %1452 = vmatprep.mubr.bf16.mxu1 %v2620_v6  ;;  %1613 = vmatprep.mubr.bf16.mxu0 %v2623_v7 }
 0x17d   :  { %1453 = vmatmul.mubr.bf16.gmra.mrb[72].mxu1 %v2622_v8  ;;  %1614 = vmatmul.mubr.bf16.gmra.mrb[72].mxu0 %v2625_v9 }
 0x17e   :  { %1460 = vmatprep.mubr.bf16.mxu1 %v2626_v10  ;;  %1621 = vmatprep.mubr.bf16.mxu0 %v2629_v11 }
 0x185   :  { %1461 = vmatmul.mubr.bf16.gmra.mrb[76].mxu1 %v2628_v12  ;;  %1622 = vmatmul.mubr.bf16.gmra.mrb[76].mxu0 %v2631_v13  ;;  %v3362_v12 = vpop.permute.xlu0 %1805  ;;  %v3364_v13 = vpop.permute.xlu1 %1800 }
 0x186   :  { %1468 = vmatprep.mubr.bf16.mxu1 %v2632_v4  ;;  %1629 = vmatprep.mubr.bf16.mxu0 %v2635_v5 }
 0x18d   :  { %1469 = vmatmul.mubr.bf16.gmra.mrb[80].mxu1 %v2634_v36  ;;  %1630 = vmatmul.mubr.bf16.gmra.mrb[80].mxu0 %v2637_v37 }
 0x18e   :  { %1476 = vmatprep.mubr.bf16.mxu1 %v2638_v14  ;;  %1637 = vmatprep.mubr.bf16.mxu0 %v2641_v15 }
 0x195   :  { %1477 = vmatmul.mubr.bf16.gmra.mrb[84].mxu1 %v2640_v18  ;;  %1638 = vmatmul.mubr.bf16.gmra.mrb[84].mxu0 %v2643_v19 }
 0x196   :  { %1484 = vmatprep.mubr.bf16.mxu1 %v2644_v22  ;;  %1645 = vmatprep.mubr.bf16.mxu0 %v2647_v23 }
 0x19d   :  { %1485 = vmatmul.mubr.bf16.gmra.mrb[88].mxu1 %v2646_v0  ;;  %1646 = vmatmul.mubr.bf16.gmra.mrb[88].mxu0 %v2649_v24 }
 0x19e   :  { %1492 = vmatprep.mubr.bf16.mxu1 %v2650_v25  ;;  %1653 = vmatprep.mubr.bf16.mxu0 %v2653_v1 }
 0x1a5   :  { %1493 = vmatmul.mubr.bf16.gmra.mrb[92].mxu1 %v2652_v32  ;;  %1654 = vmatmul.mubr.bf16.gmra.mrb[92].mxu0 %v2655_v26 }
 0x200   :  { %v2236_v58 = vpop.f32.mrb[32].mxu1  ;;  %v2348_v59 = vpop.f32.mrb[32].mxu0 }
 0x201   :  { %v2237_v60 = vpop.f32.mrb[33].mxu1  ;;  %v2349_v49 = vpop.f32.mrb[33].mxu0 }
 0x202   :  { %v2238_v61 = vadd.f32 %v2237_v60, %v2236_v58  ;;  %v2239_v62 = vpop.f32.mrb[34].mxu1  ;;  %v2350_v63 = vadd.f32 %v2349_v49, %v2348_v59  ;;  %v2351_v2 = vpop.f32.mrb[34].mxu0 }
 0x203   :  { %v2240_v3 = vpop.f32.mrb[35].mxu1  ;;  %v2352_v6 = vpop.f32.mrb[35].mxu0 }
 0x204   :  { %v1375_v7 = vadd.f32 %v2238_v61, %v863_v27  ;;  %v2241_v8 = vadd.f32 %v2240_v3, %v2239_v62  ;;  %v2353_v9 = vadd.f32 %v2352_v6, %v2351_v2  ;;  %v3367_v61 = vpop.permute.xlu0 %1815  ;;  %v3369_v62 = vpop.permute.xlu1 %1810 }
 0x206   :  { %v1378_v10 = vadd.f32 %v2241_v8, %v868_v28  ;;  %v1536_v11 = vadd.f32 %v2350_v63, %v1375_v7 }
 0x208   :  { %v1662_v4 = vmul.f32 0.2, %v1536_v11  ;;  %v2242_v5 = vpop.f32.mrb[36].mxu1  ;;  %v1539_v36 = vadd.f32 %v2353_v9, %v1378_v10  ;;  %v2354_v37 = vpop.f32.mrb[36].mxu0 }
 0x209   :  { %v2243_v14 = vpop.f32.mrb[37].mxu1  ;;  %v2355_v15 = vpop.f32.mrb[37].mxu0 }
 0x20a   :  { %v1694_v18 = vmax.f32 %v1536_v11, %v1662_v4  ;;  %v2244_v19 = vadd.f32 %v2243_v14, %v2242_v5  ;;  %v1663_v22 = vmul.f32 0.2, %v1539_v36  ;;  %v2245_v23 = vpop.f32.mrb[38].mxu1  ;;  %v2356_v0 = vadd.f32 %v2355_v15, %v2354_v37  ;;  %v2357_v24 = vpop.f32.mrb[38].mxu0 }
 0x20b   :  { %v2246_v25 = vpop.f32.mrb[39].mxu1  ;;  %v2358_v1 = vpop.f32.mrb[39].mxu0 }
 0x20c   :  { %v1918_v32 = vmul.f32 %v1761_v50, %v1694_v18  ;;  %v1383_v26 = vadd.f32 %v2244_v19, %v873_v33  ;;  %v1695_v27 = vmax.f32 %v1539_v36, %v1663_v22  ;;  %v2247_v28 = vadd.f32 %v2246_v25, %v2245_v23 }
 0x20d   :  { %v2359_v58 = vadd.f32 %v2358_v1, %v2357_v24  ;;  %v3378_v1 = vpop.permute.xlu0 %1825 }
 0x20e   :  { %v1919_v59 = vmul.f32 %v1766_v47, %v1695_v27  ;;  %v1386_v60 = vadd.f32 %v2247_v28, %v3312_v21  ;;  %v1544_v49 = vadd.f32 %v2356_v0, %v1383_v26  ;;  %v1951_v63 = vsel %vm1950_vm3, %v1918_v32, 0.0  ;;  %v3380_v32 = vpop.permute.xlu1 %1820 }
 0x210   :  { %v1952_v2 = vsel %vm1950_vm3, %v1919_v59, 0.0  ;;  %v1664_v3 = vmul.f32 0.2, %v1544_v49  ;;  %v2248_v6 = vpop.f32.mrb[40].mxu1  ;;  %v1547_v50 = vadd.f32 %v2359_v58, %v1386_v60  ;;  %v2360_v33 = vpop.f32.mrb[40].mxu0 }
 0x211   :  { %v1953_v7 = vadd.f32 %v1952_v2, %v1951_v63  ;;  %v2249_v8 = vpop.f32.mrb[41].mxu1  ;;  %v2361_v9 = vpop.f32.mrb[41].mxu0 }
 0x212   :  { %v1696_v10 = vmax.f32 %v1544_v49, %v1664_v3  ;;  %v2250_v47 = vadd.f32 %v2249_v8, %v2248_v6  ;;  %v1665_v11 = vmul.f32 0.2, %v1547_v50  ;;  %v2251_v21 = vpop.f32.mrb[42].mxu1  ;;  %v2362_v4 = vadd.f32 %v2361_v9, %v2360_v33  ;;  %v2363_v5 = vpop.f32.mrb[42].mxu0 }
 0x213   :  { %v2252_v36 = vpop.f32.mrb[43].mxu1  ;;  %v2364_v37 = vpop.f32.mrb[43].mxu0 }
 0x214   :  { %v1920_v14 = vmul.f32 %v3352_v54, %v1696_v10  ;;  %v1391_v15 = vadd.f32 %v2250_v47, %v3310_v20  ;;  %v1697_v18 = vmax.f32 %v1547_v50, %v1665_v11  ;;  %v2253_v19 = vadd.f32 %v2252_v36, %v2251_v21  ;;  %v3388_v36 = vpop.permute.xlu0 %1835 }
 0x215   :  { %v2365_v22 = vadd.f32 %v2364_v37, %v2363_v5  ;;  %v3390_v37 = vpop.permute.xlu1 %1830 }
 0x216   :  { %v1954_v23 = vsel %vm1950_vm3, %v1920_v14, 0.0  ;;  %v1921_v0 = vmul.f32 %v3350_v51, %v1697_v18  ;;  %v1394_v24 = vadd.f32 %v2253_v19, %v3316_v17  ;;  %v1552_v25 = vadd.f32 %v2362_v4, %v1391_v15 }
 0x217   :  { %v1955_v26 = vadd.f32 %v1954_v23, %v1953_v7 }
 0x218   :  { %v1956_v27 = vsel %vm1950_vm3, %v1921_v0, 0.0  ;;  %v1666_v54 = vmul.f32 0.2, %v1552_v25  ;;  %v2254_v28 = vpop.f32.mrb[44].mxu1  ;;  %v1555_v20 = vadd.f32 %v2365_v22, %v1394_v24  ;;  %v2366_v58 = vpop.f32.mrb[44].mxu0 }
 0x219   :  { %v1957_v59 = vadd.f32 %v1956_v27, %v1955_v26  ;;  %v2255_v60 = vpop.f32.mrb[45].mxu1  ;;  %v2367_v49 = vpop.f32.mrb[45].mxu0 }
 0x21a   :  { %v1698_v63 = vmax.f32 %v1552_v25, %v1666_v54  ;;  %v2256_v2 = vadd.f32 %v2255_v60, %v2254_v28  ;;  %v1667_v51 = vmul.f32 0.2, %v1555_v20  ;;  %v2257_v3 = vpop.f32.mrb[46].mxu1  ;;  %v2368_v17 = vadd.f32 %v2367_v49, %v2366_v58  ;;  %v2369_v6 = vpop.f32.mrb[46].mxu0 }
 0x21b   :  { %v2258_v50 = vpop.f32.mrb[47].mxu1  ;;  %v2370_v33 = vpop.f32.mrb[47].mxu0 }
 0x21c   :  { %v1922_v8 = vmul.f32 %v3356_v56, %v1698_v63  ;;  %v1399_v7 = vadd.f32 %v2256_v2, %v3314_v16  ;;  %v1699_v9 = vmax.f32 %v1555_v20, %v1667_v51  ;;  %v2259_v10 = vadd.f32 %v2258_v50, %v2257_v3 }
 0x21d   :  { %v2371_v47 = vadd.f32 %v2370_v33, %v2369_v6  ;;  %v3400_v6 = vpop.permute.xlu1 %1840 }
 0x21e   :  { %v1958_v11 = vsel %vm1950_vm3, %v1922_v8, 0.0  ;;  %v1923_v21 = vmul.f32 %v3354_v55, %v1699_v9  ;;  %v1402_v4 = vadd.f32 %v2259_v10, %v3320_v30  ;;  %v1560_v5 = vadd.f32 %v2368_v17, %v1399_v7  ;;  %v3398_v17 = vpop.permute.xlu0 %1845 }
 0x21f   :  { %v1959_v14 = vadd.f32 %v1958_v11, %v1957_v59 }
 0x220   :  { %v1960_v15 = vsel %vm1950_vm3, %v1923_v21, 0.0  ;;  %v1668_v56 = vmul.f32 0.2, %v1560_v5  ;;  %v2260_v18 = vpop.f32.mrb[48].mxu1  ;;  %v1563_v16 = vadd.f32 %v2371_v47, %v1402_v4  ;;  %v2372_v19 = vpop.f32.mrb[48].mxu0 }
 0x221   :  { %v1961_v22 = vadd.f32 %v1960_v15, %v1959_v14  ;;  %v2261_v23 = vpop.f32.mrb[49].mxu1  ;;  %v2373_v0 = vpop.f32.mrb[49].mxu0 }
 0x222   :  { %v1700_v24 = vmax.f32 %v1560_v5, %v1668_v56  ;;  %v1669_v25 = vmul.f32 0.2, %v1563_v16  ;;  %v2262_v55 = vadd.f32 %v2261_v23, %v2260_v18  ;;  %v2263_v26 = vpop.f32.mrb[50].mxu1  ;;  %v2374_v30 = vadd.f32 %v2373_v0, %v2372_v19  ;;  %v2375_v27 = vpop.f32.mrb[50].mxu0 }
 0x223   :  { %v2264_v54 = vpop.f32.mrb[51].mxu1  ;;  %v2376_v28 = vpop.f32.mrb[51].mxu0 }
 0x224   :  { %v1924_v20 = vmul.f32 %v3360_v48, %v1700_v24  ;;  %v1701_v58 = vmax.f32 %v1563_v16, %v1669_v25  ;;  %v1407_v59 = vadd.f32 %v2262_v55, %v3318_v29  ;;  %v2265_v60 = vadd.f32 %v2264_v54, %v2263_v26  ;;  %v3408_v55 = vpop.permute.xlu0 %977  ;;  %v3410_v26 = vpop.permute.xlu1 %1850 }
 0x225   :  { %v2377_v49 = vadd.f32 %v2376_v28, %v2375_v27 }
 0x226   :  { %v1962_v63 = vsel %vm1950_vm3, %v1924_v20, 0.0  ;;  %v1925_v2 = vmul.f32 %v3358_v57, %v1701_v58  ;;  %v1410_v51 = vadd.f32 %v2265_v60, %v3324_v34  ;;  %v1568_v3 = vadd.f32 %v2374_v30, %v1407_v59 }
 0x227   :  { %v1963_v50 = vadd.f32 %v1962_v63, %v1961_v22 }
 0x228   :  { %v1964_v33 = vsel %vm1950_vm3, %v1925_v2, 0.0  ;;  %v1670_v48 = vmul.f32 0.2, %v1568_v3  ;;  %v1571_v8 = vadd.f32 %v2377_v49, %v1410_v51  ;;  %v2266_v7 = vpop.f32.mrb[52].mxu1  ;;  %v2378_v29 = vpop.f32.mrb[52].mxu0 }
 0x229   :  { %v1965_v9 = vadd.f32 %v1964_v33, %v1963_v50  ;;  %v2267_v10 = vpop.f32.mrb[53].mxu1  ;;  %v2379_v47 = vpop.f32.mrb[53].mxu0 }
 0x22a   :  { %v1702_v11 = vmax.f32 %v1568_v3, %v1670_v48  ;;  %v1671_v21 = vmul.f32 0.2, %v1571_v8  ;;  %v2268_v57 = vadd.f32 %v2267_v10, %v2266_v7  ;;  %v2269_v4 = vpop.f32.mrb[54].mxu1  ;;  %v2380_v34 = vadd.f32 %v2379_v47, %v2378_v29  ;;  %v2381_v5 = vpop.f32.mrb[54].mxu0 }
 0x22b   :  { %v2270_v14 = vpop.f32.mrb[55].mxu1  ;;  %v2382_v15 = vpop.f32.mrb[55].mxu0 }
 0x22c   :  { %v1926_v56 = vmul.f32 %v3364_v13, %v1702_v11  ;;  %v1703_v18 = vmax.f32 %v1571_v8, %v1671_v21  ;;  %v1415_v16 = vadd.f32 %v2268_v57, %v3322_v31  ;;  %v2271_v19 = vadd.f32 %v2270_v14, %v2269_v4  ;;  %v3418_v11 = vpop.permute.xlu0 %982  ;;  %v3420_v21 = vpop.permute.xlu1 %1855 }
 0x22d   :  { %v2383_v22 = vadd.f32 %v2382_v15, %v2381_v5 }
 0x22e   :  { %v1966_v23 = vsel %vm1950_vm3, %v1926_v56, 0.0  ;;  %v1927_v0 = vmul.f32 %v3362_v12, %v1703_v18  ;;  %v1418_v24 = vadd.f32 %v2271_v19, %v3328_v38  ;;  %v1576_v25 = vadd.f32 %v2380_v34, %v1415_v16 }
 0x22f   :  { %v1967_v30 = vadd.f32 %v1966_v23, %v1965_v9 }
 0x230   :  { %v1968_v27 = vsel %vm1950_vm3, %v1927_v0, 0.0  ;;  %v1672_v13 = vmul.f32 0.2, %v1576_v25  ;;  %v1579_v54 = vadd.f32 %v2383_v22, %v1418_v24  ;;  %v2272_v28 = vpop.f32.mrb[56].mxu1  ;;  %v2384_v31 = vpop.f32.mrb[56].mxu0 }
 0x231   :  { %v1969_v20 = vadd.f32 %v1968_v27, %v1967_v30  ;;  %v2273_v58 = vpop.f32.mrb[57].mxu1  ;;  %v2385_v59 = vpop.f32.mrb[57].mxu0 }
 0x232   :  { %v1704_v60 = vmax.f32 %v1576_v25, %v1672_v13  ;;  %v1673_v49 = vmul.f32 0.2, %v1579_v54  ;;  %v2274_v12 = vadd.f32 %v2273_v58, %v2272_v28  ;;  %v2275_v63 = vpop.f32.mrb[58].mxu1  ;;  %v2386_v38 = vadd.f32 %v2385_v59, %v2384_v31  ;;  %v2387_v2 = vpop.f32.mrb[58].mxu0 }
 0x233   :  { %v2276_v51 = vpop.f32.mrb[59].mxu1  ;;  %v2388_v3 = vpop.f32.mrb[59].mxu0 }
 0x234   :  { %v1928_v50 = vmul.f32 %v3369_v62, %v1704_v60  ;;  %v1705_v33 = vmax.f32 %v1579_v54, %v1673_v49  ;;  %v1423_v48 = vadd.f32 %v2274_v12, %v3326_v35  ;;  %v2277_v8 = vadd.f32 %v2276_v51, %v2275_v63  ;;  %v3428_v58 = vpop.permute.xlu0 %987  ;;  %v3430_v59 = vpop.permute.xlu1 %1860 }
 0x235   :  { %v2389_v7 = vadd.f32 %v2388_v3, %v2387_v2 }
 0x236   :  { %v1970_v29 = vsel %vm1950_vm3, %v1928_v50, 0.0  ;;  %v1929_v9 = vmul.f32 %v3367_v61, %v1705_v33  ;;  %v1426_v10 = vadd.f32 %v2277_v8, %v3332_v40  ;;  %v1584_v47 = vadd.f32 %v2386_v38, %v1423_v48 }
 0x237   :  { %v1971_v57 = vadd.f32 %v1970_v29, %v1969_v20 }
 0x238   :  { %v1972_v4 = vsel %vm1950_vm3, %v1929_v9, 0.0  ;;  %v1674_v62 = vmul.f32 0.2, %v1584_v47  ;;  %v1587_v34 = vadd.f32 %v2389_v7, %v1426_v10  ;;  %v2278_v5 = vpop.f32.mrb[60].mxu1  ;;  %v2390_v35 = vpop.f32.mrb[60].mxu0 }
 0x239   :  { %v1973_v14 = vadd.f32 %v1972_v4, %v1971_v57  ;;  %v2279_v15 = vpop.f32.mrb[61].mxu1  ;;  %v2391_v56 = vpop.f32.mrb[61].mxu0 }
 0x23a   :  { %v1706_v18 = vmax.f32 %v1584_v47, %v1674_v62  ;;  %v1675_v16 = vmul.f32 0.2, %v1587_v34  ;;  %v2280_v61 = vadd.f32 %v2279_v15, %v2278_v5  ;;  %v2281_v19 = vpop.f32.mrb[62].mxu1  ;;  %v2392_v40 = vadd.f32 %v2391_v56, %v2390_v35  ;;  %v2393_v22 = vpop.f32.mrb[62].mxu0 }
 0x23b   :  { %v2282_v23 = vpop.f32.mrb[63].mxu1  ;;  %v2394_v0 = vpop.f32.mrb[63].mxu0 }
 0x23c   :  { %v1930_v24 = vmul.f32 %v3380_v32, %v1706_v18  ;;  %v1707_v25 = vmax.f32 %v1587_v34, %v1675_v16  ;;  %v1431_v30 = vadd.f32 %v2280_v61, %v3330_v39  ;;  %v2283_v27 = vadd.f32 %v2282_v23, %v2281_v19  ;;  %v3438_v35 = vpop.permute.xlu0 %992 }
 0x23d   :  { %v2395_v13 = vadd.f32 %v2394_v0, %v2393_v22 }
 0x23e   :  { %v1974_v54 = vsel %vm1950_vm3, %v1930_v24, 0.0  ;;  %v1931_v28 = vmul.f32 %v3378_v1, %v1707_v25  ;;  %v1434_v31 = vadd.f32 %v2283_v27, %v3336_v42  ;;  %v1592_v20 = vadd.f32 %v2392_v40, %v1431_v30 }
 0x23f   :  { %v1975_v60 = vadd.f32 %v1974_v54, %v1973_v14  ;;  %v3440_v14 = vpop.permute.xlu1 %1865 }
 0x240   :  { %v1976_v49 = vsel %vm1950_vm3, %v1931_v28, 0.0  ;;  %v1676_v32 = vmul.f32 0.2, %v1592_v20  ;;  %v1595_v12 = vadd.f32 %v2395_v13, %v1434_v31  ;;  %v2284_v63 = vpop.f32.mrb[64].mxu1  ;;  %v2396_v39 = vpop.f32.mrb[64].mxu0 }
 0x241   :  { %v1977_v38 = vadd.f32 %v1976_v49, %v1975_v60  ;;  %v2285_v2 = vpop.f32.mrb[65].mxu1  ;;  %v2397_v51 = vpop.f32.mrb[65].mxu0 }
 0x242   :  { %v1708_v3 = vmax.f32 %v1592_v20, %v1676_v32  ;;  %v1677_v50 = vmul.f32 0.2, %v1595_v12  ;;  %v2286_v1 = vadd.f32 %v2285_v2, %v2284_v63  ;;  %v2287_v33 = vpop.f32.mrb[66].mxu1  ;;  %v2398_v42 = vadd.f32 %v2397_v51, %v2396_v39  ;;  %v2399_v48 = vpop.f32.mrb[66].mxu0 }
 0x243   :  { %v2288_v8 = vpop.f32.mrb[67].mxu1  ;;  %v2400_v7 = vpop.f32.mrb[67].mxu0 }
 0x244   :  { %v1932_v29 = vmul.f32 %v3390_v37, %v1708_v3  ;;  %v1709_v9 = vmax.f32 %v1595_v12, %v1677_v50  ;;  %v1439_v10 = vadd.f32 %v2286_v1, %v3334_v41  ;;  %v2289_v47 = vadd.f32 %v2288_v8, %v2287_v33  ;;  %v3448_v12 = vpop.permute.xlu0 %997  ;;  %v3450_v63 = vpop.permute.xlu1 %1870 }
 0x245   :  { %v2401_v57 = vadd.f32 %v2400_v7, %v2399_v48 }
 0x246   :  { %v1978_v4 = vsel %vm1950_vm3, %v1932_v29, 0.0  ;;  %v1933_v62 = vmul.f32 %v3388_v36, %v1709_v9  ;;  %v1442_v34 = vadd.f32 %v2289_v47, %v3340_v44  ;;  %v1600_v5 = vadd.f32 %v2398_v42, %v1439_v10 }
 0x247   :  { %v1979_v15 = vadd.f32 %v1978_v4, %v1977_v38 }
 0x248   :  { %v1980_v56 = vsel %vm1950_vm3, %v1933_v62, 0.0  ;;  %v1678_v37 = vmul.f32 0.2, %v1600_v5  ;;  %v1603_v18 = vadd.f32 %v2401_v57, %v1442_v34  ;;  %v2290_v16 = vpop.f32.mrb[68].mxu1  ;;  %v2402_v41 = vpop.f32.mrb[68].mxu0 }
 0x249   :  { %v1981_v61 = vadd.f32 %v1980_v56, %v1979_v15  ;;  %v2291_v19 = vpop.f32.mrb[69].mxu1  ;;  %v2403_v40 = vpop.f32.mrb[69].mxu0 }
 0x24a   :  { %v1710_v22 = vmax.f32 %v1600_v5, %v1678_v37  ;;  %v1679_v23 = vmul.f32 0.2, %v1603_v18  ;;  %v2292_v36 = vadd.f32 %v2291_v19, %v2290_v16  ;;  %v2293_v0 = vpop.f32.mrb[70].mxu1  ;;  %v2404_v44 = vadd.f32 %v2403_v40, %v2402_v41  ;;  %v2405_v24 = vpop.f32.mrb[70].mxu0 }
 0x24b   :  { %v2294_v25 = vpop.f32.mrb[71].mxu1  ;;  %v2406_v30 = vpop.f32.mrb[71].mxu0 }
 0x24c   :  { %v1934_v27 = vmul.f32 %v3400_v6, %v1710_v22  ;;  %v1711_v13 = vmax.f32 %v1603_v18, %v1679_v23  ;;  %v1447_v54 = vadd.f32 %v2292_v36, %v3338_v43  ;;  %v2295_v28 = vadd.f32 %v2294_v25, %v2293_v0  ;;  %v3458_v56 = vpop.permute.xlu0 %1002  ;;  %v1876_v37 = vpop.permute.xlu1 %1875 }
 0x24d   :  { %v2407_v31 = vadd.f32 %v2406_v30, %v2405_v24 }
 0x24e   :  { %v1982_v20 = vsel %vm1950_vm3, %v1934_v27, 0.0  ;;  %v1935_v60 = vmul.f32 %v3398_v17, %v1711_v13  ;;  %v1450_v49 = vadd.f32 %v2295_v28, %v3344_v52  ;;  %v1608_v32 = vadd.f32 %v2404_v44, %v1447_v54 }
 0x24f   :  { %v1983_v39 = vadd.f32 %v1982_v20, %v1981_v61 }
 0x250   :  { %v1984_v38 = vsel %vm1950_vm3, %v1935_v60, 0.0  ;;  %v1680_v6 = vmul.f32 0.2, %v1608_v32  ;;  %v1611_v2 = vadd.f32 %v2407_v31, %v1450_v49  ;;  %v2296_v51 = vpop.f32.mrb[72].mxu1  ;;  %v2408_v43 = vpop.f32.mrb[72].mxu0 }
 0x251   :  { %v1985_v3 = vadd.f32 %v1984_v38, %v1983_v39  ;;  %v2297_v50 = vpop.f32.mrb[73].mxu1  ;;  %v2409_v1 = vpop.f32.mrb[73].mxu0 }
 0x252   :  { %v1712_v33 = vmax.f32 %v1608_v32, %v1680_v6  ;;  %v1681_v42 = vmul.f32 0.2, %v1611_v2  ;;  %v2298_v17 = vadd.f32 %v2297_v50, %v2296_v51  ;;  %v2299_v48 = vpop.f32.mrb[74].mxu1  ;;  %v2410_v52 = vadd.f32 %v2409_v1, %v2408_v43  ;;  %v2411_v8 = vpop.f32.mrb[74].mxu0 }
 0x253   :  { %v2300_v7 = vpop.f32.mrb[75].mxu1  ;;  %v2412_v29 = vpop.f32.mrb[75].mxu0 }
 0x254   :  { %v1936_v9 = vmul.f32 %v3410_v26, %v1712_v33  ;;  %v1713_v10 = vmax.f32 %v1611_v2, %v1681_v42  ;;  %v1455_v47 = vadd.f32 %v2298_v17, %v3342_v45  ;;  %v2301_v57 = vadd.f32 %v2300_v7, %v2299_v48  ;;  %v3466_v32 = vpop.permute.xlu0 %1007  ;;  %v1881_v39 = vpop.permute.xlu1 %1880 }
 0x255   :  { %v2413_v4 = vadd.f32 %v2412_v29, %v2411_v8 }
 0x256   :  { %v1986_v62 = vsel %vm1950_vm3, %v1936_v9, 0.0  ;;  %v1937_v34 = vmul.f32 %v3420_v21, %v1713_v10  ;;  %v1458_v5 = vadd.f32 %v2301_v57, %v3348_v46  ;;  %v1616_v15 = vadd.f32 %v2410_v52, %v1455_v47 }
 0x257   :  { %v1987_v18 = vadd.f32 %v1986_v62, %v1985_v3 }
 0x258   :  { %v1988_v16 = vsel %vm1950_vm3, %v1937_v34, 0.0  ;;  %v1682_v41 = vmul.f32 0.2, %v1616_v15  ;;  %v1619_v26 = vadd.f32 %v2413_v4, %v1458_v5  ;;  %v2302_v61 = vpop.f32.mrb[76].mxu1  ;;  %v2414_v19 = vpop.f32.mrb[76].mxu0 }
 0x259   :  { %v1989_v45 = vadd.f32 %v1988_v16, %v1987_v18  ;;  %v2303_v40 = vpop.f32.mrb[77].mxu1  ;;  %v2415_v22 = vpop.f32.mrb[77].mxu0 }
 0x25a   :  { %v1714_v23 = vmax.f32 %v1616_v15, %v1682_v41  ;;  %v1683_v36 = vmul.f32 0.2, %v1619_v26  ;;  %v2304_v0 = vadd.f32 %v2303_v40, %v2302_v61  ;;  %v2305_v21 = vpop.f32.mrb[78].mxu1  ;;  %v2416_v44 = vadd.f32 %v2415_v22, %v2414_v19  ;;  %v2417_v46 = vpop.f32.mrb[78].mxu0 }
 0x25b   :  { %v2306_v24 = vpop.f32.mrb[79].mxu1  ;;  %v2418_v25 = vpop.f32.mrb[79].mxu0 }
 0x25c   :  { %v1938_v30 = vmul.f32 %v3430_v59, %v1714_v23  ;;  %v1715_v27 = vmax.f32 %v1619_v26, %v1683_v36  ;;  %v1463_v13 = vadd.f32 %v2304_v0, %v3346_v53  ;;  %v2307_v54 = vadd.f32 %v2306_v24, %v2305_v21  ;;  %v3473_v34 = vpop.permute.xlu0 %1012  ;;  %v1886_v5 = vpop.permute.xlu1 %1885 }
 0x25d   :  { %v2419_v28 = vadd.f32 %v2418_v25, %v2417_v46 }
 0x25e   :  { %v1990_v31 = vsel %vm1950_vm3, %v1938_v30, 0.0  ;;  %v1939_v20 = vmul.f32 %v3440_v14, %v1715_v27  ;;  %v1466_v60 = vadd.f32 %v2307_v54, %v3408_v55  ;;  %v1624_v49 = vadd.f32 %v2416_v44, %v1463_v13 }
 0x25f   :  { %v1991_v38 = vadd.f32 %v1990_v31, %v1989_v45 }
 0x260   :  { %v1992_v6 = vsel %vm1950_vm3, %v1939_v20, 0.0  ;;  %v1684_v2 = vmul.f32 0.2, %v1624_v49  ;;  %v1627_v59 = vadd.f32 %v2419_v28, %v1466_v60  ;;  %v2308_v51 = vpop.f32.mrb[80].mxu1  ;;  %v2420_v43 = vpop.f32.mrb[80].mxu0 }
 0x261   :  { %v1993_v53 = vadd.f32 %v1992_v6, %v1991_v38  ;;  %v2309_v3 = vpop.f32.mrb[81].mxu1  ;;  %v2421_v50 = vpop.f32.mrb[81].mxu0 }
 0x262   :  { %v1716_v1 = vmax.f32 %v1624_v49, %v1684_v2  ;;  %v1685_v33 = vmul.f32 0.2, %v1627_v59  ;;  %v2310_v42 = vadd.f32 %v2309_v3, %v2308_v51  ;;  %v2311_v14 = vpop.f32.mrb[82].mxu1  ;;  %v2422_v17 = vadd.f32 %v2421_v50, %v2420_v43  ;;  %v2423_v55 = vpop.f32.mrb[82].mxu0 }
 0x263   :  { %v2312_v48 = vpop.f32.mrb[83].mxu1  ;;  %v2424_v52 = vpop.f32.mrb[83].mxu0 }
 0x264   :  { %v1940_v8 = vmul.f32 %v3450_v63, %v1716_v1  ;;  %v1717_v7 = vmax.f32 %v1627_v59, %v1685_v33  ;;  %v1471_v29 = vadd.f32 %v2310_v42, %v3418_v11  ;;  %v2313_v9 = vadd.f32 %v2312_v48, %v2311_v14  ;;  %v1018_v28 = vpop.permute.xlu0 %1017  ;;  %v1891_v31 = vpop.permute.xlu1 %1890 }
 0x265   :  { %v2425_v10 = vadd.f32 %v2424_v52, %v2423_v55 }
 0x266   :  { %v1994_v47 = vsel %vm1950_vm3, %v1940_v8, 0.0  ;;  %v1941_v57 = vmul.f32 %v1876_v37, %v1717_v7  ;;  %v1474_v4 = vadd.f32 %v2313_v9, %v3428_v58  ;;  %v1632_v62 = vadd.f32 %v2422_v17, %v1471_v29 }
 0x267   :  { %v1995_v15 = vadd.f32 %v1994_v47, %v1993_v53 }
 0x268   :  { %v1996_v18 = vsel %vm1950_vm3, %v1941_v57, 0.0  ;;  %v1686_v16 = vmul.f32 0.2, %v1632_v62  ;;  %v1635_v41 = vadd.f32 %v2425_v10, %v1474_v4  ;;  %v2314_v63 = vpop.f32.mrb[84].mxu1  ;;  %v2426_v26 = vpop.f32.mrb[84].mxu0 }
 0x269   :  { %v1997_v61 = vadd.f32 %v1996_v18, %v1995_v15  ;;  %v2315_v11 = vpop.f32.mrb[85].mxu1  ;;  %v2427_v19 = vpop.f32.mrb[85].mxu0 }
 0x26a   :  { %v1718_v45 = vmax.f32 %v1632_v62, %v1686_v16  ;;  %v1687_v40 = vmul.f32 0.2, %v1635_v41  ;;  %v2316_v22 = vadd.f32 %v2315_v11, %v2314_v63  ;;  %v2317_v37 = vpop.f32.mrb[86].mxu1  ;;  %v2428_v23 = vadd.f32 %v2427_v19, %v2426_v26  ;;  %v2429_v58 = vpop.f32.mrb[86].mxu0 }
 0x26b   :  { %v2318_v36 = vpop.f32.mrb[87].mxu1  ;;  %v2430_v0 = vpop.f32.mrb[87].mxu0 }
 0x26c   :  { %v1942_v21 = vmul.f32 %v1881_v39, %v1718_v45  ;;  %v1719_v44 = vmax.f32 %v1635_v41, %v1687_v40  ;;  %v1479_v46 = vadd.f32 %v2316_v22, %v3438_v35  ;;  %v2319_v24 = vadd.f32 %v2318_v36, %v2317_v37  ;;  %v1896_v48 = vpop.permute.xlu1 %1895  ;;  %v1901_v10 = vpop.permute.xlu0 %1900 }
 0x26d   :  { %v2431_v25 = vadd.f32 %v2430_v0, %v2429_v58 }
 0x26e   :  { %v1998_v30 = vsel %vm1950_vm3, %v1942_v21, 0.0  ;;  %v1943_v27 = vmul.f32 %v1886_v5, %v1719_v44  ;;  %v1482_v13 = vadd.f32 %v2319_v24, %v3448_v12  ;;  %v1640_v54 = vadd.f32 %v2428_v23, %v1479_v46 }
 0x26f   :  { %v1999_v20 = vadd.f32 %v1998_v30, %v1997_v61 }
 0x270   :  { %v2000_v60 = vsel %vm1950_vm3, %v1943_v27, 0.0  ;;  %v1688_v49 = vmul.f32 0.2, %v1640_v54  ;;  %v1643_v38 = vadd.f32 %v2431_v25, %v1482_v13  ;;  %v2320_v6 = vpop.f32.mrb[88].mxu1  ;;  %v2432_v39 = vpop.f32.mrb[88].mxu0 }
 0x271   :  { %v2001_v2 = vadd.f32 %v2000_v60, %v1999_v20  ;;  %v2321_v59 = vpop.f32.mrb[89].mxu1  ;;  %v2433_v35 = vpop.f32.mrb[89].mxu0 }
 0x272   :  { %v1720_v51 = vmax.f32 %v1640_v54, %v1688_v49  ;;  %v1689_v43 = vmul.f32 0.2, %v1643_v38  ;;  %v2322_v53 = vadd.f32 %v2321_v59, %v2320_v6  ;;  %v2323_v3 = vpop.f32.mrb[90].mxu1  ;;  %v2434_v50 = vadd.f32 %v2433_v35, %v2432_v39  ;;  %v2435_v1 = vpop.f32.mrb[90].mxu0 }
 0x273   :  { %v2324_v12 = vpop.f32.mrb[91].mxu1  ;;  %v2436_v33 = vpop.f32.mrb[91].mxu0 }
 0x274   :  { %v1944_v42 = vmul.f32 %v1891_v31, %v1720_v51  ;;  %v1721_v14 = vmax.f32 %v1643_v38, %v1689_v43  ;;  %v1487_v17 = vadd.f32 %v2322_v53, %v3458_v56  ;;  %v2325_v55 = vadd.f32 %v2324_v12, %v2323_v3  ;;  %v1906_v58 = vpop.permute.xlu1 %1905  ;;  %v1911_v20 = vpop.permute.xlu0 %1910 }
 0x275   :  { %v2437_v52 = vadd.f32 %v2436_v33, %v2435_v1 }
 0x276   :  { %v2002_v8 = vsel %vm1950_vm3, %v1944_v42, 0.0  ;;  %v1945_v7 = vmul.f32 %v1896_v48, %v1721_v14  ;;  %v1490_v29 = vadd.f32 %v2325_v55, %v3466_v32  ;;  %v1648_v9 = vadd.f32 %v2434_v50, %v1487_v17 }
 0x277   :  { %v2003_v47 = vadd.f32 %v2002_v8, %v2001_v2 }
 0x278   :  { %v2004_v57 = vsel %vm1950_vm3, %v1945_v7, 0.0  ;;  %v1690_v4 = vmul.f32 0.2, %v1648_v9  ;;  %v1651_v62 = vadd.f32 %v2437_v52, %v1490_v29  ;;  %v2326_v5 = vpop.f32.mrb[92].mxu1  ;;  %v2438_v15 = vpop.f32.mrb[92].mxu0 }
 0x279   :  { %v2005_v18 = vadd.f32 %v2004_v57, %v2003_v47  ;;  %v2327_v16 = vpop.f32.mrb[93].mxu1  ;;  %v2439_v56 = vpop.f32.mrb[93].mxu0 }
 0x27a   :  { %v1722_v41 = vmax.f32 %v1648_v9, %v1690_v4  ;;  %v1691_v63 = vmul.f32 0.2, %v1651_v62  ;;  %v2328_v26 = vadd.f32 %v2327_v16, %v2326_v5  ;;  %v2329_v61 = vpop.f32.mrb[94].mxu1  ;;  %v2440_v11 = vadd.f32 %v2439_v56, %v2438_v15  ;;  %v2441_v19 = vpop.f32.mrb[94].mxu0 }
 0x27b   :  { %v2330_v45 = vpop.f32.mrb[95].mxu1  ;;  %v2442_v32 = vpop.f32.mrb[95].mxu0 }
 0x27c   :  { %v1946_v40 = vmul.f32 %v1901_v10, %v1722_v41  ;;  %v1723_v22 = vmax.f32 %v1651_v62, %v1691_v63  ;;  %v1495_v37 = vadd.f32 %v2328_v26, %v3473_v34  ;;  %v2331_v23 = vadd.f32 %v2330_v45, %v2329_v61  ;;  %v1916_v34 = vpop.permute.xlu1 %1915  ;;  %v2024_v1 = vpop.permute.xlu0 %2023 }
 0x27d   :  { %v2443_v36 = vadd.f32 %v2442_v32, %v2441_v19 }
 0x27e   :  { %v2006_v0 = vsel %vm1950_vm3, %v1946_v40, 0.0  ;;  %v1947_v21 = vmul.f32 %v1906_v58, %v1723_v22  ;;  %v1498_v44 = vadd.f32 %v2331_v23, %v1018_v28  ;;  %v1656_v46 = vadd.f32 %v2440_v11, %v1495_v37 }
 0x27f   :  { %v2007_v24 = vadd.f32 %v2006_v0, %v2005_v18  ;;  %v2026_v28 = vlaneseq }
 0x280   :  { %v2008_v25 = vsel %vm1950_vm3, %v1947_v21, 0.0  ;;  %v1692_v30 = vmul.f32 0.2, %v1656_v46  ;;  %v1659_v27 = vadd.f32 %v2443_v36, %v1498_v44 }
 0x281   :  { %v2009_v13 = vadd.f32 %v2008_v25, %v2007_v24  ;;  %v2027_v51 = vshrl.u32 %v2026_v28, 7 }
 0x282   :  { %v1724_v54 = vmax.f32 %v1656_v46, %v1692_v30  ;;  %v1693_v31 = vmul.f32 0.2, %v1659_v27 }
 0x283   :  { %v2028_v3 = vsub.s32 0, %v2027_v51 }
 0x284   :  { %v1948_v60 = vmul.f32 %v1911_v20, %v1724_v54  ;;  %v1725_v49 = vmax.f32 %v1659_v27, %v1693_v31 }
 0x285   :  { %v2029_v33 = vrot.slane %v2024_v1, %v2028_v3 }
 0x286   :  { %v2010_v38 = vsel %vm1950_vm3, %v1948_v60, 0.0  ;;  %v1949_v6 = vmul.f32 %v1916_v34, %v1725_v49 }
 0x287   :  { %v2011_v39 = vadd.f32 %v2010_v38, %v2009_v13 }
 0x288   :  { %v2012_v2 = vsel %vm1950_vm3, %v1949_v6, 0.0 }
 0x289   :  { %v2013_v59 = vadd.f32 %v2012_v2, %v2011_v39 }
 0x28b   :  { %v2014_v35 = vrot.slane %v2013_v59, 4 }
 0x28d   :  { %v2015_v43 = vadd.f32 %v2014_v35, %v2013_v59 }
 0x28f   :  { %v2016_v53 = vrot.slane %v2015_v43, 2 }
 0x291   :  { %v2017_v50 = vadd.f32 %v2016_v53, %v2015_v43 }
 0x293   :  { %v2018_v12 = vrot.slane %v2017_v50, 1 }
 0x295   :  { %v2019_v42 = vadd.f32 %v2018_v12, %v2017_v50 }
 0x297   :  { %v2030_v14 = vadd.f32 %v2029_v33, %v2019_v42 }
 0x299   :  { %v2184_v17 = vmul.f32 -1.442695, %v2030_v14 }
 0x29b   :  { %2656 = vpow2.f32 %v2184_v17 }
 0x2a5   :  { %v2657_v55 = vpop.eup %2656 }
 0x2a6   :  { %v2034_v48 = vadd.f32 1.0, %v2657_v55 }
 0x2a8   :  { %2658 = vrcp.f32 %v2034_v48 }
 0x2b2   :  { %v2659_v52 = vpop.eup %2658 }
 0x2b3   :  { %2038 = vst.msk [vmem:[#allocation3] sm:$0x1] %vm2037_vm4, %v2659_v52 }
 0x2b4   :  { %2671 = shalt.err (!%p2668_p4)
}
 0x2b5   :  { %s2672_s22 = scalar_lea.hbm %s3507_s6, 16 }
 0x2b6   :  { %p2673_p5 = scmp.ne.s32.totalorder %s3507_s6, %s2672_s22  ;;  %p2676_p6 = scmp.lt.u32.totalorder %s2672_s22, %s3507_s6 }
 0x2b8   :  { %p2678_p7 = pnand %p2676_p6, %p2673_p5 }
 0x2ba   :  { %2681 = shalt.err (!%p2678_p7)
}
 0x2bb   :  { %2048 = dma.vmem_to_hbm [thread:$0]  %s2046_s18, 16, %s3507_s6, [#allocation4]  }
 0x2bc   :  { %2682 = dma.done.wait [#allocation4], 16  }
 0x2bd   :  { %2683 = vsyncadd [#allocation4], 4294967280 }
 0x2be   :  { %2052 = vsyncpa [#allocation4], 1 }

</bundles_post_ra>
